<compile_context>
chip_gen: v7x
topology: tpu7x:2x2x1
jax: 0.10.0
libtpu: 0.0.40
codegen_flags: <defaults>
</compile_context>

<pallas_src>
import functools

import jax
import jax.numpy as jnp
from jax.experimental import pallas as pl
from jax.experimental.pallas import tpu as pltpu

NEG_SLOPE = 0.2      # PyG GATv2Conv default negative_slope
MASK_BIAS = -1e30    # additive softmax mask for non-edges (f32-safe)


# ---------------------------------------------------------------------------
# Kernel
# ---------------------------------------------------------------------------
def _gat_layer(feat, mask_bias, w_ref, b_ref, a_ref, bias_ref,
               *, heads, out_ch, n):
    """One GATv2Conv layer (concat over heads). Returns [N, H*C] in vregs.

    feat:      [N, Din]      activations (already in vregs)
    mask_bias: [N, N]        0 where edge j -> i exists, -1e30 otherwise
    w_ref:     [Din, 2*H*C]  wl || wr   (fused source/target projection)
    b_ref:     [1, 2*H*C]    bl || br
    a_ref:     [H*C, H]      block-structured att: rows h*C:(h+1)*C of col h
    bias_ref:  [1, H*C]
    """
    hc = heads * out_ch

    # Single fused projection on the MXU: [N, 2*H*C]
    xlr = jnp.dot(feat, w_ref[...], preferred_element_type=jnp.float32) + b_ref[...]
    xl = xlr[:, :hc]              # source-side transform (messages)
    xr = xlr[:, hc:]              # target-side transform

    # Pairwise features for all heads/channels at once: e[i, j, :] = xr[i] + xl[j]
    e = xr[:, None, :] + xl[None, :, :]                   # [N_tgt, N_src, H*C]
    e = jnp.where(e > 0, e, NEG_SLOPE * e)                # leaky_relu, one pass

    # All heads' attention scores in ONE MXU contraction:
    #   s_flat[i*N + j, h] = sum_c att[h, c] * e[i, j, h*C + c]
    s_flat = jnp.dot(e.reshape(n * n, hc), a_ref[...],
                     preferred_element_type=jnp.float32)  # [N*N, H]
    s = s_flat.reshape(n, n, heads)                       # [N_tgt, N_src, H]

    outs = []
    for h in range(heads):                                # static, heads <= 2
        # Mask added AFTER the att contraction (non-edges -> -1e30).
        sh = s[:, :, h] + mask_bias                       # [N_tgt, N_src]
        # Masked softmax over sources (lane axis); every row has a self-loop.
        m = jnp.max(sh, axis=1, keepdims=True)
        p = jnp.exp(sh - m)
        alpha = p / jnp.sum(p, axis=1, keepdims=True)     # exact divide (parity)
        # Aggregate messages on the MXU.
        outs.append(jnp.dot(alpha, xl[:, h * out_ch:(h + 1) * out_ch],
                            preferred_element_type=jnp.float32))
    out = outs[0] if heads == 1 else jnp.concatenate(outs, axis=1)
    return out + bias_ref[...]


def ke_gatv2_kernel(x_ref, adj_ref,
                    w1_ref, b1_ref, a1_ref, bias1_ref,
                    w2_ref, b2_ref, a2_ref, bias2_ref,
                    we1_ref, be1_ref, we2_ref, be2_ref,
                    o_ref, *, n, hidden_dim, out_dim):
    x = x_ref[...]
    # Shared additive softmax mask: computed once, reused by both layers.
    mask_bias = jnp.where(adj_ref[...] > 0, 0.0, MASK_BIAS)

    # ---- conv1 (heads=2) + ReLU -> [N, 2*hidden] ----------------------------
    h = _gat_layer(x, mask_bias, w1_ref, b1_ref, a1_ref, bias1_ref,
                   heads=2, out_ch=hidden_dim, n=n)
    h = jnp.maximum(h, 0.0)

    # ---- conv2 (heads=1) -> [N, out_dim] ------------------------------------
    z = _gat_layer(h, mask_bias, w2_ref, b2_ref, a2_ref, bias2_ref,
                   heads=1, out_ch=out_dim, n=n)

    # ---- log_softmax over features (dim=1) ----------------------------------
    m = jnp.max(z, axis=1, keepdims=True)
    ls = z - m - jnp.log(jnp.sum(jnp.exp(z - m), axis=1, keepdims=True))

    # ---- KnowledgeEnhancer: y = ls + sigmoid(relu(ls@W1+b1)@W2+b2) ----------
    hm = jnp.dot(ls, we1_ref[...], preferred_element_type=jnp.float32) + be1_ref[...]
    hm = jnp.maximum(hm, 0.0)
    g = jnp.dot(hm, we2_ref[...], preferred_element_type=jnp.float32) + be2_ref[...]
    g = 1.0 / (1.0 + jnp.exp(-g))                         # exact sigmoid (parity)
    o_ref[...] = ls + g                                   # single full-width store


# ---------------------------------------------------------------------------
# Wrapper (glue)
# ---------------------------------------------------------------------------
def _block_att(att):
    """[H, C] attention vectors -> block-structured [H*C, H] matmul RHS."""
    h, c = att.shape
    a = jnp.zeros((h * c, h), att.dtype)
    for i in range(h):
        a = a.at[i * c:(i + 1) * c, i].set(att[i])
    return a


def ke_gatv2_forward(x, adj, params, *, hidden_dim, out_dim):
    c1, c2, enh = params["conv1"], params["conv2"], params["enh"]
    # One-time host-side fusion: lin_l || lin_r projections + block att matrices.
    w1 = jnp.concatenate([c1["wl"], c1["wr"]], axis=1)
    b1 = jnp.concatenate([c1["bl"], c1["br"]], axis=1)
    a1 = _block_att(c1["att"])
    w2 = jnp.concatenate([c2["wl"], c2["wr"]], axis=1)
    b2 = jnp.concatenate([c2["bl"], c2["br"]], axis=1)
    a2 = _block_att(c2["att"])

    n = x.shape[0]
    args = (x, adj, w1, b1, a1, c1["bias"],
            w2, b2, a2, c2["bias"],
            enh["w1"], enh["b1"], enh["w2"], enh["b2"])

    vmem = pl.BlockSpec(memory_space=pltpu.MemorySpace.VMEM)
    kern = functools.partial(ke_gatv2_kernel, n=n,
                             hidden_dim=hidden_dim, out_dim=out_dim)
    # TODO(synk): add a "parallel" target-row grid axis and/or a graph-batch
    #             grid axis (dimension_semantics=("parallel",)) when scaling.
    return pl.pallas_call(
        kern,
        out_shape=jax.ShapeDtypeStruct((n, out_dim), jnp.float32),
        in_specs=[vmem] * len(args),
        out_specs=vmem,
    )(*args)


# ---------------------------------------------------------------------------
# Deterministic parameter init + graph construction
# ---------------------------------------------------------------------------
def init_params(key, in_dim, hidden_dim, out_dim):
    ks = jax.random.split(key, 16)
    nrm = lambda k, shp: (jax.random.normal(k, shp, jnp.float32) * 0.1)
    conv1 = {
        "wl": nrm(ks[0], (in_dim, 2 * hidden_dim)),
        "bl": nrm(ks[1], (1, 2 * hidden_dim)),
        "wr": nrm(ks[2], (in_dim, 2 * hidden_dim)),
        "br": nrm(ks[3], (1, 2 * hidden_dim)),
        "att": nrm(ks[4], (2, hidden_dim)),
        "bias": nrm(ks[5], (1, 2 * hidden_dim)),
    }
    conv2 = {
        "wl": nrm(ks[6], (2 * hidden_dim, out_dim)),
        "bl": nrm(ks[7], (1, out_dim)),
        "wr": nrm(ks[8], (2 * hidden_dim, out_dim)),
        "br": nrm(ks[9], (1, out_dim)),
        "att": nrm(ks[10], (1, out_dim)),
        "bias": nrm(ks[11], (1, out_dim)),
    }
    enh = {
        "w1": nrm(ks[12], (out_dim, out_dim)),
        "b1": nrm(ks[13], (1, out_dim)),
        "w2": nrm(ks[14], (out_dim, out_dim)),
        "b2": nrm(ks[15], (1, out_dim)),
    }
    return {"conv1": conv1, "conv2": conv2, "enh": enh}


def edge_index_to_adj(edge_index, num_nodes):
    src, dst = edge_index[0], edge_index[1]
    adj = jnp.zeros((num_nodes, num_nodes), jnp.float32)
    adj = adj.at[dst, src].set(1.0)          # adj[i, j] = 1 if edge j -> i
    idx = jnp.arange(num_nodes)
    adj = adj.at[idx, idx].set(1.0)          # add_self_loops=True (PyG default)
    return adj


# ---------------------------------------------------------------------------
# Main
# ---------------------------------------------------------------------------
if __name__ == "__main__":
    N, IN_DIM, HIDDEN_DIM, OUT_DIM = 8, 8, 16, 8

    key = jax.random.PRNGKey(0)
    kx, kp = jax.random.split(key)

    x = jax.random.normal(kx, (N, IN_DIM), jnp.float32)

    # Deterministic bidirectional ring graph: edge_index[0]=src, edge_index[1]=dst.
    nodes = jnp.arange(N)
    src = jnp.concatenate([nodes, nodes])
    dst = jnp.concatenate([(nodes + 1) % N, (nodes - 1) % N])
    edge_index = jnp.stack([src, dst]).astype(jnp.int32)   # [2, 2N]

    adj = edge_index_to_adj(edge_index, N)
    params = init_params(kp, IN_DIM, HIDDEN_DIM, OUT_DIM)

    out = ke_gatv2_forward(x, adj, params, hidden_dim=HIDDEN_DIM, out_dim=OUT_DIM)
    out = jax.block_until_ready(out)

    assert out.shape == (N, OUT_DIM)
    assert bool(jnp.all(jnp.isfinite(out)))
    print("KERNEL_OK")
</pallas_src>

<mosaic_0001>
module attributes {stable_mosaic.version = 11 : i64} {
  func.func @ke_gatv2_kernel(%arg0: memref<8x8xf32, #tpu.memory_space<vmem>>, %arg1: memref<8x8xf32, #tpu.memory_space<vmem>>, %arg2: memref<8x64xf32, #tpu.memory_space<vmem>>, %arg3: memref<1x64xf32, #tpu.memory_space<vmem>>, %arg4: memref<32x2xf32, #tpu.memory_space<vmem>>, %arg5: memref<1x32xf32, #tpu.memory_space<vmem>>, %arg6: memref<32x16xf32, #tpu.memory_space<vmem>>, %arg7: memref<1x16xf32, #tpu.memory_space<vmem>>, %arg8: memref<8x1xf32, #tpu.memory_space<vmem>>, %arg9: memref<1x8xf32, #tpu.memory_space<vmem>>, %arg10: memref<8x8xf32, #tpu.memory_space<vmem>>, %arg11: memref<1x8xf32, #tpu.memory_space<vmem>>, %arg12: memref<8x8xf32, #tpu.memory_space<vmem>>, %arg13: memref<1x8xf32, #tpu.memory_space<vmem>>, %arg14: memref<8x8xf32, #tpu.memory_space<vmem>>) attributes {dimension_semantics = [], scalar_prefetch = 0 : i64, scratch_operands = 0 : i64, tpu.core_type = #tpu.core_type<tc>} {
    %c0 = arith.constant 0 : index
    %c0_0 = arith.constant 0 : index
    %0 = vector.load %arg0[%c0, %c0_0] : memref<8x8xf32, #tpu.memory_space<vmem>>, vector<8x8xf32>
    %c0_1 = arith.constant 0 : index
    %c0_2 = arith.constant 0 : index
    %1 = vector.load %arg1[%c0_1, %c0_2] : memref<8x8xf32, #tpu.memory_space<vmem>>, vector<8x8xf32>
    %cst = arith.constant 0.000000e+00 : f32
    %2 = vector.broadcast %cst : f32 to vector<8x8xf32>
    %3 = arith.cmpf ogt, %1, %2 : vector<8x8xf32>
    %cst_3 = arith.constant 0.000000e+00 : f32
    %cst_4 = arith.constant -1.000000e+30 : f32
    %4 = vector.broadcast %cst_3 : f32 to vector<8x8xf32>
    %5 = vector.broadcast %cst_4 : f32 to vector<8x8xf32>
    %6 = arith.select %3, %4, %5 : vector<8x8xi1>, vector<8x8xf32>
    %c0_5 = arith.constant 0 : index
    %c0_6 = arith.constant 0 : index
    %7 = vector.load %arg2[%c0_5, %c0_6] : memref<8x64xf32, #tpu.memory_space<vmem>>, vector<8x64xf32>
    %cst_7 = arith.constant dense<0.000000e+00> : vector<8x64xf32>
    %8 = tpu.matmul %0, %7, %cst_7 {dimension_numbers = #tpu.dot_dimension_numbers<[1], [0], [0], [1], [0, 0, 1, 1], [], []>} : vector<8x8xf32>, vector<8x64xf32>, vector<8x64xf32> -> vector<8x64xf32>
    %c0_8 = arith.constant 0 : index
    %c0_9 = arith.constant 0 : index
    %9 = vector.load %arg3[%c0_8, %c0_9] : memref<1x64xf32, #tpu.memory_space<vmem>>, vector<1x64xf32>
    %10 = vector.broadcast %9 : vector<1x64xf32> to vector<8x64xf32>
    %11 = arith.addf %8, %10 : vector<8x64xf32>
    %12 = vector.extract_strided_slice %11 {offsets = [0, 0], sizes = [8, 32], strides = [1, 1]} : vector<8x64xf32> to vector<8x32xf32>
    %13 = vector.extract_strided_slice %11 {offsets = [0, 32], sizes = [8, 32], strides = [1, 1]} : vector<8x64xf32> to vector<8x32xf32>
    %14 = vector.shape_cast %13 : vector<8x32xf32> to vector<8x1x32xf32>
    %15 = vector.shape_cast %12 : vector<8x32xf32> to vector<1x8x32xf32>
    %16 = vector.broadcast %14 : vector<8x1x32xf32> to vector<8x8x32xf32>
    %17 = vector.broadcast %15 : vector<1x8x32xf32> to vector<8x8x32xf32>
    %18 = arith.addf %16, %17 : vector<8x8x32xf32>
    %cst_10 = arith.constant 0.000000e+00 : f32
    %19 = vector.broadcast %cst_10 : f32 to vector<8x8x32xf32>
    %20 = arith.cmpf ogt, %18, %19 : vector<8x8x32xf32>
    %cst_11 = arith.constant 2.000000e-01 : f32
    %21 = vector.broadcast %cst_11 : f32 to vector<8x8x32xf32>
    %22 = arith.mulf %21, %18 : vector<8x8x32xf32>
    %23 = arith.select %20, %18, %22 : vector<8x8x32xi1>, vector<8x8x32xf32>
    %24 = vector.shape_cast %23 : vector<8x8x32xf32> to vector<64x32xf32>
    %c0_12 = arith.constant 0 : index
    %c0_13 = arith.constant 0 : index
    %25 = vector.load %arg4[%c0_12, %c0_13] : memref<32x2xf32, #tpu.memory_space<vmem>>, vector<32x2xf32>
    %cst_14 = arith.constant dense<0.000000e+00> : vector<64x2xf32>
    %26 = tpu.matmul %24, %25, %cst_14 {dimension_numbers = #tpu.dot_dimension_numbers<[1], [0], [0], [1], [0, 0, 1, 1], [], []>} : vector<64x32xf32>, vector<32x2xf32>, vector<64x2xf32> -> vector<64x2xf32>
    %27 = vector.shape_cast %26 : vector<64x2xf32> to vector<8x8x2xf32>
    %28 = vector.extract_strided_slice %27 {offsets = [0, 0, 0], sizes = [8, 8, 1], strides = [1, 1, 1]} : vector<8x8x2xf32> to vector<8x8x1xf32>
    %29 = vector.shape_cast %28 : vector<8x8x1xf32> to vector<8x8xf32>
    %30 = arith.addf %29, %6 : vector<8x8xf32>
    %cst_15 = arith.constant dense<0xFF800000> : vector<8xf32>
    %31 = vector.multi_reduction <maximumf>, %30, %cst_15 [1] : vector<8x8xf32> to vector<8xf32>
    %32 = vector.shape_cast %31 : vector<8xf32> to vector<8x1xf32>
    %33 = vector.broadcast %32 : vector<8x1xf32> to vector<8x8xf32>
    %34 = arith.subf %30, %33 : vector<8x8xf32>
    %35 = math.exp %34 : vector<8x8xf32>
    %cst_16 = arith.constant dense<0.000000e+00> : vector<8xf32>
    %36 = vector.multi_reduction <add>, %35, %cst_16 [1] : vector<8x8xf32> to vector<8xf32>
    %37 = vector.shape_cast %36 : vector<8xf32> to vector<8x1xf32>
    %38 = vector.broadcast %37 : vector<8x1xf32> to vector<8x8xf32>
    %39 = arith.divf %35, %38 : vector<8x8xf32>
    %40 = vector.extract_strided_slice %12 {offsets = [0, 0], sizes = [8, 16], strides = [1, 1]} : vector<8x32xf32> to vector<8x16xf32>
    %cst_17 = arith.constant dense<0.000000e+00> : vector<8x16xf32>
    %41 = tpu.matmul %39, %40, %cst_17 {dimension_numbers = #tpu.dot_dimension_numbers<[1], [0], [0], [1], [0, 0, 1, 1], [], []>} : vector<8x8xf32>, vector<8x16xf32>, vector<8x16xf32> -> vector<8x16xf32>
    %42 = vector.extract_strided_slice %27 {offsets = [0, 0, 1], sizes = [8, 8, 1], strides = [1, 1, 1]} : vector<8x8x2xf32> to vector<8x8x1xf32>
    %43 = vector.shape_cast %42 : vector<8x8x1xf32> to vector<8x8xf32>
    %44 = arith.addf %43, %6 : vector<8x8xf32>
    %cst_18 = arith.constant dense<0xFF800000> : vector<8xf32>
    %45 = vector.multi_reduction <maximumf>, %44, %cst_18 [1] : vector<8x8xf32> to vector<8xf32>
    %46 = vector.shape_cast %45 : vector<8xf32> to vector<8x1xf32>
    %47 = vector.broadcast %46 : vector<8x1xf32> to vector<8x8xf32>
    %48 = arith.subf %44, %47 : vector<8x8xf32>
    %49 = math.exp %48 : vector<8x8xf32>
    %cst_19 = arith.constant dense<0.000000e+00> : vector<8xf32>
    %50 = vector.multi_reduction <add>, %49, %cst_19 [1] : vector<8x8xf32> to vector<8xf32>
    %51 = vector.shape_cast %50 : vector<8xf32> to vector<8x1xf32>
    %52 = vector.broadcast %51 : vector<8x1xf32> to vector<8x8xf32>
    %53 = arith.divf %49, %52 : vector<8x8xf32>
    %54 = vector.extract_strided_slice %12 {offsets = [0, 16], sizes = [8, 16], strides = [1, 1]} : vector<8x32xf32> to vector<8x16xf32>
    %cst_20 = arith.constant dense<0.000000e+00> : vector<8x16xf32>
    %55 = tpu.matmul %53, %54, %cst_20 {dimension_numbers = #tpu.dot_dimension_numbers<[1], [0], [0], [1], [0, 0, 1, 1], [], []>} : vector<8x8xf32>, vector<8x16xf32>, vector<8x16xf32> -> vector<8x16xf32>
    %56 = tpu.concatenate %41, %55 in 1 : vector<8x16xf32>, vector<8x16xf32> -> vector<8x32xf32>
    %c0_21 = arith.constant 0 : index
    %c0_22 = arith.constant 0 : index
    %57 = vector.load %arg5[%c0_21, %c0_22] : memref<1x32xf32, #tpu.memory_space<vmem>>, vector<1x32xf32>
    %58 = vector.broadcast %57 : vector<1x32xf32> to vector<8x32xf32>
    %59 = arith.addf %56, %58 : vector<8x32xf32>
    %cst_23 = arith.constant 0.000000e+00 : f32
    %60 = vector.broadcast %cst_23 : f32 to vector<8x32xf32>
    %61 = arith.maximumf %59, %60 : vector<8x32xf32>
    %c0_24 = arith.constant 0 : index
    %c0_25 = arith.constant 0 : index
    %62 = vector.load %arg6[%c0_24, %c0_25] : memref<32x16xf32, #tpu.memory_space<vmem>>, vector<32x16xf32>
    %cst_26 = arith.constant dense<0.000000e+00> : vector<8x16xf32>
    %63 = tpu.matmul %61, %62, %cst_26 {dimension_numbers = #tpu.dot_dimension_numbers<[1], [0], [0], [1], [0, 0, 1, 1], [], []>} : vector<8x32xf32>, vector<32x16xf32>, vector<8x16xf32> -> vector<8x16xf32>
    %c0_27 = arith.constant 0 : index
    %c0_28 = arith.constant 0 : index
    %64 = vector.load %arg7[%c0_27, %c0_28] : memref<1x16xf32, #tpu.memory_space<vmem>>, vector<1x16xf32>
    %65 = vector.broadcast %64 : vector<1x16xf32> to vector<8x16xf32>
    %66 = arith.addf %63, %65 : vector<8x16xf32>
    %67 = vector.extract_strided_slice %66 {offsets = [0, 0], sizes = [8, 8], strides = [1, 1]} : vector<8x16xf32> to vector<8x8xf32>
    %68 = vector.extract_strided_slice %66 {offsets = [0, 8], sizes = [8, 8], strides = [1, 1]} : vector<8x16xf32> to vector<8x8xf32>
    %69 = vector.shape_cast %68 : vector<8x8xf32> to vector<8x1x8xf32>
    %70 = vector.shape_cast %67 : vector<8x8xf32> to vector<1x8x8xf32>
    %71 = vector.broadcast %69 : vector<8x1x8xf32> to vector<8x8x8xf32>
    %72 = vector.broadcast %70 : vector<1x8x8xf32> to vector<8x8x8xf32>
    %73 = arith.addf %71, %72 : vector<8x8x8xf32>
    %cst_29 = arith.constant 0.000000e+00 : f32
    %74 = vector.broadcast %cst_29 : f32 to vector<8x8x8xf32>
    %75 = arith.cmpf ogt, %73, %74 : vector<8x8x8xf32>
    %cst_30 = arith.constant 2.000000e-01 : f32
    %76 = vector.broadcast %cst_30 : f32 to vector<8x8x8xf32>
    %77 = arith.mulf %76, %73 : vector<8x8x8xf32>
    %78 = arith.select %75, %73, %77 : vector<8x8x8xi1>, vector<8x8x8xf32>
    %79 = vector.shape_cast %78 : vector<8x8x8xf32> to vector<64x8xf32>
    %c0_31 = arith.constant 0 : index
    %c0_32 = arith.constant 0 : index
    %80 = vector.load %arg8[%c0_31, %c0_32] : memref<8x1xf32, #tpu.memory_space<vmem>>, vector<8x1xf32>
    %cst_33 = arith.constant dense<0.000000e+00> : vector<64x1xf32>
    %81 = tpu.matmul %79, %80, %cst_33 {dimension_numbers = #tpu.dot_dimension_numbers<[1], [0], [0], [1], [0, 0, 1, 1], [], []>} : vector<64x8xf32>, vector<8x1xf32>, vector<64x1xf32> -> vector<64x1xf32>
    %82 = vector.shape_cast %81 : vector<64x1xf32> to vector<8x8x1xf32>
    %83 = vector.shape_cast %82 : vector<8x8x1xf32> to vector<8x8xf32>
    %84 = arith.addf %83, %6 : vector<8x8xf32>
    %cst_34 = arith.constant dense<0xFF800000> : vector<8xf32>
    %85 = vector.multi_reduction <maximumf>, %84, %cst_34 [1] : vector<8x8xf32> to vector<8xf32>
    %86 = vector.shape_cast %85 : vector<8xf32> to vector<8x1xf32>
    %87 = vector.broadcast %86 : vector<8x1xf32> to vector<8x8xf32>
    %88 = arith.subf %84, %87 : vector<8x8xf32>
    %89 = math.exp %88 : vector<8x8xf32>
    %cst_35 = arith.constant dense<0.000000e+00> : vector<8xf32>
    %90 = vector.multi_reduction <add>, %89, %cst_35 [1] : vector<8x8xf32> to vector<8xf32>
    %91 = vector.shape_cast %90 : vector<8xf32> to vector<8x1xf32>
    %92 = vector.broadcast %91 : vector<8x1xf32> to vector<8x8xf32>
    %93 = arith.divf %89, %92 : vector<8x8xf32>
    %cst_36 = arith.constant dense<0.000000e+00> : vector<8x8xf32>
    %94 = tpu.matmul %93, %67, %cst_36 {dimension_numbers = #tpu.dot_dimension_numbers<[1], [0], [0], [1], [0, 0, 1, 1], [], []>} : vector<8x8xf32>, vector<8x8xf32>, vector<8x8xf32> -> vector<8x8xf32>
    %c0_37 = arith.constant 0 : index
    %c0_38 = arith.constant 0 : index
    %95 = vector.load %arg9[%c0_37, %c0_38] : memref<1x8xf32, #tpu.memory_space<vmem>>, vector<1x8xf32>
    %96 = vector.broadcast %95 : vector<1x8xf32> to vector<8x8xf32>
    %97 = arith.addf %94, %96 : vector<8x8xf32>
    %cst_39 = arith.constant dense<0xFF800000> : vector<8xf32>
    %98 = vector.multi_reduction <maximumf>, %97, %cst_39 [1] : vector<8x8xf32> to vector<8xf32>
    %99 = vector.shape_cast %98 : vector<8xf32> to vector<8x1xf32>
    %100 = vector.broadcast %99 : vector<8x1xf32> to vector<8x8xf32>
    %101 = arith.subf %97, %100 : vector<8x8xf32>
    %102 = vector.broadcast %99 : vector<8x1xf32> to vector<8x8xf32>
    %103 = arith.subf %97, %102 : vector<8x8xf32>
    %104 = math.exp %103 : vector<8x8xf32>
    %cst_40 = arith.constant dense<0.000000e+00> : vector<8xf32>
    %105 = vector.multi_reduction <add>, %104, %cst_40 [1] : vector<8x8xf32> to vector<8xf32>
    %106 = vector.shape_cast %105 : vector<8xf32> to vector<8x1xf32>
    %107 = math.log %106 : vector<8x1xf32>
    %108 = vector.broadcast %107 : vector<8x1xf32> to vector<8x8xf32>
    %109 = arith.subf %101, %108 : vector<8x8xf32>
    %c0_41 = arith.constant 0 : index
    %c0_42 = arith.constant 0 : index
    %110 = vector.load %arg10[%c0_41, %c0_42] : memref<8x8xf32, #tpu.memory_space<vmem>>, vector<8x8xf32>
    %cst_43 = arith.constant dense<0.000000e+00> : vector<8x8xf32>
    %111 = tpu.matmul %109, %110, %cst_43 {dimension_numbers = #tpu.dot_dimension_numbers<[1], [0], [0], [1], [0, 0, 1, 1], [], []>} : vector<8x8xf32>, vector<8x8xf32>, vector<8x8xf32> -> vector<8x8xf32>
    %c0_44 = arith.constant 0 : index
    %c0_45 = arith.constant 0 : index
    %112 = vector.load %arg11[%c0_44, %c0_45] : memref<1x8xf32, #tpu.memory_space<vmem>>, vector<1x8xf32>
    %113 = vector.broadcast %112 : vector<1x8xf32> to vector<8x8xf32>
    %114 = arith.addf %111, %113 : vector<8x8xf32>
    %cst_46 = arith.constant 0.000000e+00 : f32
    %115 = vector.broadcast %cst_46 : f32 to vector<8x8xf32>
    %116 = arith.maximumf %114, %115 : vector<8x8xf32>
    %c0_47 = arith.constant 0 : index
    %c0_48 = arith.constant 0 : index
    %117 = vector.load %arg12[%c0_47, %c0_48] : memref<8x8xf32, #tpu.memory_space<vmem>>, vector<8x8xf32>
    %cst_49 = arith.constant dense<0.000000e+00> : vector<8x8xf32>
    %118 = tpu.matmul %116, %117, %cst_49 {dimension_numbers = #tpu.dot_dimension_numbers<[1], [0], [0], [1], [0, 0, 1, 1], [], []>} : vector<8x8xf32>, vector<8x8xf32>, vector<8x8xf32> -> vector<8x8xf32>
    %c0_50 = arith.constant 0 : index
    %c0_51 = arith.constant 0 : index
    %119 = vector.load %arg13[%c0_50, %c0_51] : memref<1x8xf32, #tpu.memory_space<vmem>>, vector<1x8xf32>
    %120 = vector.broadcast %119 : vector<1x8xf32> to vector<8x8xf32>
    %121 = arith.addf %118, %120 : vector<8x8xf32>
    %cst_52 = arith.constant 0.000000e+00 : f32
    %122 = vector.broadcast %cst_52 : f32 to vector<8x8xf32>
    %123 = arith.subf %122, %121 : vector<8x8xf32>
    %124 = math.exp %123 : vector<8x8xf32>
    %cst_53 = arith.constant 1.000000e+00 : f32
    %125 = vector.broadcast %cst_53 : f32 to vector<8x8xf32>
    %126 = arith.addf %125, %124 : vector<8x8xf32>
    %cst_54 = arith.constant 1.000000e+00 : f32
    %127 = vector.broadcast %cst_54 : f32 to vector<8x8xf32>
    %128 = arith.divf %127, %126 : vector<8x8xf32>
    %129 = arith.addf %109, %128 : vector<8x8xf32>
    %c0_55 = arith.constant 0 : index
    %c0_56 = arith.constant 0 : index
    %130 = vector.load %arg14[%c0_55, %c0_56] : memref<8x8xf32, #tpu.memory_space<vmem>>, vector<8x8xf32>
    tpu.vector_store %arg14[%c0_55, %c0_56], %129 {strides = array<i32>} : memref<8x8xf32, #tpu.memory_space<vmem>>, vector<8x8xf32>,
    return
  }
}

</mosaic_0001>

<bundles_post_ra>
// kernel: tpu_custom_call.1
= control target key start
LH: loop header
LB: loop body
LE: loop exit
PB: predicated region body
PF: predicated region fallthrough
CT: control target
= control target key end

     0   :  { %vm60_vm0 = vcmask 64512   ;;  %v2636_v2 = vmov 0.0   ;;  %vm2637_vm1 = vmmov 0   ;;  %s3345_s0 = inlined_call_operand.vmem [shape: f32[8,8], index: 0, kind: input, shape index: {}]   ;;  %s3346_s1 = inlined_call_operand.vmem [shape: f32[8,8], index: 1, kind: input, shape index: {}]   ;;  %s3347_s2 = inlined_call_operand.vmem [shape: f32[8,64], index: 2, kind: input, shape index: {}]   ;;  %s3348_s3 = inlined_call_operand.vmem [shape: f32[1,64], index: 3, kind: input, shape index: {}]   ;;  %s3349_s4 = inlined_call_operand.vmem [shape: f32[32,2], index: 4, kind: input, shape index: {}]   ;;  %s3350_s5 = inlined_call_operand.vmem [shape: f32[1,32], index: 5, kind: input, shape index: {}]   ;;  %s3351_s6 = inlined_call_operand.vmem [shape: f32[32,16], index: 6, kind: input, shape index: {}]   ;;  %s3352_s7 = inlined_call_operand.vmem [shape: f32[1,16], index: 7, kind: input, shape index: {}]   ;;  %s3353_s8 = inlined_call_operand.vmem [shape: f32[8,1], index: 8, kind: input, shape index: {}]   ;;  %s3354_s9 = inlined_call_operand.vmem [shape: f32[1,8], index: 9, kind: input, shape index: {}]   ;;  %s3355_s10 = inlined_call_operand.vmem [shape: f32[8,8], index: 10, kind: input, shape index: {}]   ;;  %s3356_s11 = inlined_call_operand.vmem [shape: f32[1,8], index: 11, kind: input, shape index: {}]   ;;  %s3357_s12 = inlined_call_operand.vmem [shape: f32[8,8], index: 12, kind: input, shape index: {}]   ;;  %s3358_s13 = inlined_call_operand.vmem [shape: f32[1,8], index: 13, kind: input, shape index: {}]   ;;  %s3359_s14 = inlined_call_operand.hbm [shape: f32[8,8], index: 14, kind: output, shape index: {}]  }
   0x1   :  { %v52_v0 = vld [vmem:[%s3347_s2] sm:$0xff]  ;;  %2380 = vmatprep.subr.mxu0 %v2636_v2  ;;  %2382 = vmatprep.mubr.msk.f32.mxu0 %vm2637_vm1, %v2636_v2 }
   0x2   :  { %v48_v1 = vld [vmem:[%s3345_s0] sm:$0xff] }
   0x3   :  { %19 = vsyncpa [#allocation3], 0  ;;  %2381 = vmatpush3.msra.mxu0 %v52_v0  ;;  %v2313_v3 = vld [vmem:[%s3348_s3] ss:$0 sm:$0xff]  ;;  %s2638_s0 = smov 32   ;;  %v260_v8 = vld [vmem:[%s3349_s4 + $0x8] sm:$0xff]  ;;  %v139_v15 = vlaneseq }
   0x4   :  { %2383 = vmatmul.mubr.msk.f32.vlgmr.msra.gmra.mrb[0].mxu0 %vm60_vm0, %v48_v1  ;;  %2405 = vmatprep.subr.mxu0 %v2636_v2  ;;  %v259_v7 = vld [vmem:[%s3349_s4] sm:$0xff]  ;;  %v261_v9 = vld [vmem:[%s3349_s4 + $0x10] sm:$0xff]  ;;  %v262_v11 = vld [vmem:[%s3349_s4 + $0x18] sm:$0xff]  ;;  %v2639_v13 = vmov 1966171168   ;;  %s2640_s4 = smov 96  }
   0x5   :  { %2407 = vmatprep.mubr.msk.f32.mxu0 %vm2637_vm1, %v2636_v2  ;;  %v2455_v10 = vpack.c.bf16 %v260_v8, %v259_v7  ;;  %v2459_v12 = vpack.c.bf16 %v262_v11, %v261_v9  ;;  %v137_v14 = vunpack.c.l.s4 %v2639_v13  ;;  %v2760_v17 = vshrl.u32 %v139_v15, 7  ;;  %v49_v60 = vld [vmem:[%s3346_s1] sm:$0xff]  ;;  %s2644_s1 = smov 112  }
   0x6   :  { %vm50_vm8 = vcmp.gt.f32.partialorder %v49_v60, 0.0  ;;  %vm287_vm11 = vcmask 261120   ;;  %vm548_vm12 = vcmask 1041409   ;;  %vm550_vm13 = vcmask 1042434  }
   0x7   :  { %2456 = vmatprep.subr.bf16.mxu1 %v2455_v10  ;;  %v138_v16 = vunpack.c.0.s8 %v137_v14  ;;  %v2773_v26 = vsub.s32 0, %v2760_v17  ;;  %v2795_v1 = vsub.s32 1, %v2760_v17  ;;  %v2805_v11 = vsub.s32 2, %v2760_v17 }
   0x8   :  { %2458 = vmatpush3.bf16.msra.mxu1 %v2455_v10  ;;  %v2802_v10 = vsub.s32 3, %v2760_v17  ;;  %v2810_v14 = vsub.s32 5, %v2760_v17  ;;  %vm552_vm14 = vcmask 1043459   ;;  %vm554_vm15 = vcmask 1044484  }
   0x9   :  { %2460 = vmatprep.subr.bf16.mxu1 %v2459_v12  ;;  %v2763_v18 = vsub.s32 %v138_v16, %v2760_v17  ;;  %v2813_v16 = vsub.s32 4, %v2760_v17 }
   0xc   :  { %2462 = vmatpush3.bf16.msra.mxu1 %v2459_v12 }
   0xd   :  { %2440 = vmatprep.subr.mxu1 %v2636_v2 }
  0xd7   :  { %v130_v4 = vpop.f32.mrb[0].mxu0 }
  0xd8   :  { %v2741_v5 = vadd.f32 %v2313_v3, %v130_v4  ;;  %v2384_v6 = vpop.f32.mrb[1].mxu0  ;;  %v2641_v3 = vmov -1e+30  }
  0xd9   :  { %v51_v4 = vsel %vm50_vm8, 0.0, %v2641_v3 }
  0xda   :  { %224 = vrot.lane.b32.xlu0 %v2741_v5, %s2638_s0  ;;  %2406 = vmatpush3.msra.mxu0 %v2741_v5  ;;  %v142_v19 = vrot.slane %v2741_v5, %v2763_v18  ;;  %v135_v20 = vcombine.high %v2741_v5, %v2741_v5  ;;  %v420_v8 = vrot.slane %v51_v4, %v2795_v1  ;;  %s2646_s0 = smov 16  }
  0xdb   :  { %2410 = vmatprep.subr.mxu0 %v2636_v2  ;;  %v413_v9 = vrot.slane %v51_v4, %v2773_v26  ;;  %v434_v12 = vrot.slane %v51_v4, %v2802_v10  ;;  %v427_v13 = vrot.slane %v51_v4, %v2805_v11 }
  0xdc   :  { %v150_v21 = vcombine.high %v142_v19, %v142_v19  ;;  %v149_v22 = vrot.slane %v135_v20, %v2763_v18  ;;  %v158_v23 = vrot.slane %v142_v19, %v2763_v18  ;;  %v448_v19 = vrot.slane %v51_v4, %v2810_v14 }
  0xdd   :  { %v441_v20 = vrot.slane %v51_v4, %v2813_v16 }
  0xde   :  { %v172_v24 = vrot.slane %v150_v21, %v2763_v18  ;;  %v151_v25 = vcombine.high %v149_v22, %v149_v22  ;;  %v180_v27 = vcombine.high %v158_v23, %v158_v23  ;;  %v165_v29 = vrot.slane %v149_v22, %v2763_v18 }
  0xdf   :  { %v187_v31 = vrot.slane %v158_v23, %v2773_v26  ;;  %v2818_v21 = vsub.s32 7, %v2760_v17  ;;  %v2821_v22 = vsub.s32 6, %v2760_v17 }
  0xe0   :  { %v182_v28 = vcombine.high %v172_v24, %v172_v24  ;;  %v179_v30 = vrot.slane %v151_v25, %v2763_v18  ;;  %v191_v32 = vrot.slane %v172_v24, %v2773_v26  ;;  %v195_v33 = vrot.slane %v180_v27, %v2773_v26 }
  0xe1   :  { %v203_v40 = vrot.slane %v165_v29, %v2773_v26  ;;  %v181_v42 = vcombine.high %v165_v29, %v165_v29  ;;  %v462_v23 = vrot.slane %v51_v4, %v2818_v21  ;;  %v455_v24 = vrot.slane %v51_v4, %v2821_v22 }
  0xe2   :  { %v199_v34 = vrot.slane %v182_v28, %v2773_v26  ;;  %v207_v41 = vrot.slane %v179_v30, %v2773_v26  ;;  %v183_v43 = vcombine.high %v179_v30, %v179_v30 }
  0xe3   :  { %v211_v52 = vrot.slane %v181_v42, %v2773_v26 }
  0xe4   :  { %v215_v53 = vrot.slane %v183_v43, %v2773_v26 }
 0x14c   :  { %v225_v35 = vpop.permute.xlu0 %224 }
 0x14d   :  { %v227_v36 = vadd.f32 %v225_v35, %v187_v31  ;;  %v228_v37 = vadd.f32 %v225_v35, %v191_v32  ;;  %v229_v38 = vadd.f32 %v225_v35, %v195_v33  ;;  %v230_v39 = vadd.f32 %v225_v35, %v199_v34 }
 0x14e   :  { %v231_v46 = vadd.f32 %v225_v35, %v203_v40  ;;  %v232_v47 = vadd.f32 %v225_v35, %v207_v41  ;;  %v233_v54 = vadd.f32 %v225_v35, %v211_v52  ;;  %v234_v55 = vadd.f32 %v225_v35, %v215_v53 }
 0x14f   :  { %vm235_vm2 = vcmp.gt.f32.partialorder %v227_v36, 0.0  ;;  %v243_v44 = vmul.f32 0.2, %v227_v36  ;;  %vm236_vm3 = vcmp.gt.f32.partialorder %v228_v37, 0.0  ;;  %v244_v45 = vmul.f32 0.2, %v228_v37 }
 0x150   :  { %v245_v50 = vmul.f32 0.2, %v229_v38  ;;  %v246_v51 = vmul.f32 0.2, %v230_v39  ;;  %vm237_vm4 = vcmp.gt.f32.partialorder %v229_v38, 0.0  ;;  %vm238_vm5 = vcmp.gt.f32.partialorder %v230_v39, 0.0 }
 0x151   :  { %v251_v48 = vsel %vm235_vm2, %v227_v36, %v243_v44  ;;  %v252_v49 = vsel %vm236_vm3, %v228_v37, %v244_v45  ;;  %v247_v58 = vmul.f32 0.2, %v231_v46  ;;  %v248_v59 = vmul.f32 0.2, %v232_v47 }
 0x152   :  { %271 = vrot.lane.b32.xlu0 %v251_v48, %s2640_s4  ;;  %273 = vrot.lane.b32.xlu1 %v252_v49, %s2640_s4  ;;  %v253_v56 = vsel %vm237_vm4, %v229_v38, %v245_v50  ;;  %v254_v57 = vsel %vm238_vm5, %v230_v39, %v246_v51  ;;  %vm239_vm6 = vcmp.gt.f32.partialorder %v231_v46, 0.0  ;;  %vm240_vm7 = vcmp.gt.f32.partialorder %v232_v47, 0.0 }
 0x153   :  { %v255_v61 = vsel %vm239_vm6, %v231_v46, %v247_v58  ;;  %v256_v62 = vsel %vm240_vm7, %v232_v47, %v248_v59  ;;  %v249_v63 = vmul.f32 0.2, %v233_v54  ;;  %v250_v0 = vmul.f32 0.2, %v234_v55 }
 0x154   :  { %vm241_vm9 = vcmp.gt.f32.partialorder %v233_v54, 0.0  ;;  %vm242_vm10 = vcmp.gt.f32.partialorder %v234_v55, 0.0  ;;  %v2642_v34 = vmov 1   ;;  %v2643_v35 = vmov 0  }
 0x155   :  { %v257_v6 = vsel %vm241_vm9, %v233_v54, %v249_v63  ;;  %v258_v7 = vsel %vm242_vm10, %v234_v55, %v250_v0  ;;  %2484 = vset.pattern.permute.xlu1 %v2642_v34  ;;  %2483 = vset.pattern.permute.xlu0 %v2643_v35  ;;  %vm556_vm2 = vcmask 1045509   ;;  %vm558_vm3 = vcmask 1046534  }
 0x156   :  { %275 = vrot.lane.b32.xlu1 %v253_v56, %s2640_s4  ;;  %277 = vrot.lane.b32.xlu0 %v254_v57, %s2640_s4  ;;  %vm560_vm4 = vcmask 1047559   ;;  %vm1320_vm5 = vcmask 130048  }
 0x15a   :  { %279 = vrot.lane.b32.xlu1 %v255_v61, %s2640_s4  ;;  %281 = vrot.lane.b32.xlu0 %v256_v62, %s2640_s4 }
 0x15e   :  { %283 = vrot.lane.b32.xlu1 %v257_v6, %s2640_s4  ;;  %285 = vrot.lane.b32.xlu0 %v258_v7, %s2640_s4  ;;  %v515_v7 = vand.u32 127, %v139_v15 }
 0x162   :  { %422 = vbcast.lane.b32.xlu0 %v420_v8, 256  ;;  %415 = vbcast.lane.b32.xlu1 %v413_v9, 256 }
 0x166   :  { %436 = vbcast.lane.b32.xlu0 %v434_v12, 256  ;;  %429 = vbcast.lane.b32.xlu1 %v427_v13, 256  ;;  %v2904_v12 = vsub.s32 %v515_v7, %v2760_v17 }
 0x16a   :  { %450 = vbcast.lane.b32.xlu0 %v448_v19, 256  ;;  %443 = vbcast.lane.b32.xlu1 %v441_v20, 256 }
 0x16e   :  { %464 = vbcast.lane.b32.xlu0 %v462_v23, 256  ;;  %457 = vbcast.lane.b32.xlu1 %v455_v24, 256 }
 0x1c4   :  { %v272_v25 = vpop.permute.xlu0 %271  ;;  %v274_v27 = vpop.permute.xlu1 %273 }
 0x1c5   :  { %2393 = vmatprep.mubr.msk.f32.mxu1 %vm287_vm11, %v272_v25 }
 0x1c6   :  { %2394 = vmatmul.mubr.msk.f32.vlgmr.msra.gmra.mrb[0].mxu1 %vm287_vm11, %v274_v27 }
 0x1c8   :  { %v276_v28 = vpop.permute.xlu1 %275  ;;  %v278_v29 = vpop.permute.xlu0 %277 }
 0x1c9   :  { %2396 = vmatprep.mubr.msk.f32.mxu1 %vm287_vm11, %v276_v28 }
 0x1ca   :  { %2397 = vmatmul.mubr.msk.f32.gmra.mrb[2].mxu1 %vm287_vm11, %v278_v29 }
 0x1cc   :  { %v280_v30 = vpop.permute.xlu1 %279  ;;  %v282_v31 = vpop.permute.xlu0 %281 }
 0x1cd   :  { %2399 = vmatprep.mubr.msk.f32.mxu1 %vm287_vm11, %v280_v30 }
 0x1ce   :  { %2400 = vmatmul.mubr.msk.f32.gmra.mrb[4].mxu1 %vm287_vm11, %v282_v31 }
 0x1d0   :  { %v284_v32 = vpop.permute.xlu1 %283  ;;  %v286_v33 = vpop.permute.xlu0 %285 }
 0x1d1   :  { %2402 = vmatprep.mubr.msk.f32.mxu1 %vm287_vm11, %v284_v32 }
 0x1d2   :  { %2403 = vmatmul.mubr.msk.f32.gmra.mrb[6].mxu1 %vm287_vm11, %v286_v33 }
 0x1d3   :  { %2442 = vmatprep.mubr.msk.f32.mxu1 %vm2637_vm1, %v2636_v2 }
 0x1d4   :  { %v2837_v36 = vpop.permute.xlu0 %422  ;;  %v2842_v40 = vpop.permute.xlu1 %415 }
 0x1d8   :  { %v2849_v44 = vpop.permute.xlu0 %436  ;;  %v2858_v48 = vpop.permute.xlu1 %429 }
 0x1dc   :  { %v2865_v52 = vpop.permute.xlu0 %450  ;;  %v2872_v54 = vpop.permute.xlu1 %443 }
 0x1e0   :  { %v2881_v56 = vpop.permute.xlu0 %464  ;;  %v2888_v58 = vpop.permute.xlu1 %457 }
 0x299   :  { %v2395_v37 = vpop.f32.mrb[0].mxu1 }
 0x29a   :  { %v2840_v38 = vadd.f32 %v2395_v37, %v2837_v36  ;;  %v370_v39 = vpop.f32.mrb[1].mxu1 }
 0x29b   :  { %v2847_v43 = vadd.f32 %v2842_v40, %v370_v39 }
 0x29c   :  { %910 = vperm.xlu1 %2484, %v2840_v38   ;;  %494 = vperm.xlu0 %2483, %v2840_v38  }
 0x29d   :  { %v2398_v41 = vpop.f32.mrb[2].mxu1 }
 0x29e   :  { %v380_v42 = vpop.f32.mrb[3].mxu1  ;;  %v2856_v47 = vadd.f32 %v2398_v41, %v2849_v44 }
 0x29f   :  { %v2863_v51 = vadd.f32 %v2858_v48, %v380_v42 }
 0x2a0   :  { %2485 = vset.pattern.permute.xlu1 %v2643_v35  ;;  %2486 = vset.pattern.permute.xlu0 %v2642_v34 }
 0x2a1   :  { %v2401_v45 = vpop.f32.mrb[4].mxu1  ;;  %491 = vperm.xlu1 %2485, %v2847_v43   ;;  %907 = vperm.xlu0 %2486, %v2847_v43  }
 0x2a2   :  { %v390_v46 = vpop.f32.mrb[5].mxu1  ;;  %v2870_v53 = vadd.f32 %v2401_v45, %v2865_v52 }
 0x2a3   :  { %v2877_v55 = vadd.f32 %v2872_v54, %v390_v46 }
 0x2a5   :  { %v2404_v49 = vpop.f32.mrb[6].mxu1  ;;  %916 = vperm.xlu0 %2486, %v2856_v47   ;;  %500 = vperm.xlu1 %2485, %v2856_v47  }
 0x2a6   :  { %v400_v50 = vpop.f32.mrb[7].mxu1  ;;  %v2886_v57 = vadd.f32 %v2404_v49, %v2881_v56 }
 0x2a7   :  { %v2895_v59 = vadd.f32 %v2888_v58, %v400_v50 }
 0x2a9   :  { %913 = vperm.xlu0 %2486, %v2863_v51   ;;  %497 = vperm.xlu1 %2485, %v2863_v51  }
 0x2ad   :  { %922 = vperm.xlu0 %2486, %v2870_v53   ;;  %506 = vperm.xlu1 %2485, %v2870_v53  }
 0x2b1   :  { %2487 = vset.pattern.permute.xlu0 %v2643_v35  ;;  %2488 = vset.pattern.permute.xlu1 %v2642_v34 }
 0x2b2   :  { %503 = vperm.xlu0 %2487, %v2877_v55   ;;  %919 = vperm.xlu1 %2488, %v2877_v55  }
 0x2b6   :  { %2491 = vset.pattern.permute.xlu0 %v2642_v34  ;;  %2489 = vset.pattern.permute.xlu1 %v2643_v35 }
 0x2b7   :  { %928 = vperm.xlu0 %2491, %v2886_v57   ;;  %512 = vperm.xlu1 %2489, %v2886_v57  }
 0x2bb   :  { %509 = vperm.xlu1 %2489, %v2895_v59   ;;  %2492 = vset.pattern.permute.xlu0 %v2643_v35 }
 0x2bf   :  { %2490 = vset.pattern.permute.xlu1 %v2642_v34 }
 0x2c0   :  { %925 = vperm.xlu1 %2490, %v2895_v59  }
 0x2c4   :  { %2493 = vset.pattern.permute.xlu1 %v2643_v35 }
 0x31b   :  { %v911_v60 = vpop.permute.xlu1 %910  ;;  %v495_v61 = vpop.permute.xlu0 %494 }
 0x31c   :  { %v523_v23 = vrot.slane %v495_v61, %v2904_v12  ;;  %v937_v31 = vrot.slane %v911_v60, %v2904_v12 }
 0x320   :  { %v492_v62 = vpop.permute.xlu1 %491  ;;  %v908_v63 = vpop.permute.xlu0 %907 }
 0x321   :  { %v519_v13 = vrot.slane %v492_v62, %v2904_v12  ;;  %v933_v27 = vrot.slane %v908_v63, %v2904_v12 }
 0x323   :  { %v549_v25 = vsel %vm548_vm12, %v523_v23, %v519_v13  ;;  %v962_v33 = vsel %vm548_vm12, %v937_v31, %v933_v27 }
 0x324   :  { %v501_v0 = vpop.permute.xlu1 %500  ;;  %v917_v3 = vpop.permute.xlu0 %916 }
 0x325   :  { %v531_v28 = vrot.slane %v501_v0, %v2904_v12  ;;  %v945_v46 = vrot.slane %v917_v3, %v2904_v12 }
 0x328   :  { %v498_v4 = vpop.permute.xlu1 %497  ;;  %v914_v6 = vpop.permute.xlu0 %913 }
 0x329   :  { %v527_v19 = vrot.slane %v498_v4, %v2904_v12  ;;  %v941_v29 = vrot.slane %v914_v6, %v2904_v12 }
 0x32b   :  { %v551_v15 = vsel %vm550_vm13, %v527_v19, %v549_v25  ;;  %v963_v39 = vsel %vm550_vm13, %v941_v29, %v962_v33 }
 0x32c   :  { %v507_v8 = vpop.permute.xlu1 %506  ;;  %v923_v9 = vpop.permute.xlu0 %922  ;;  %v553_v32 = vsel %vm552_vm14, %v531_v28, %v551_v15  ;;  %v964_v61 = vsel %vm552_vm14, %v945_v46, %v963_v39 }
 0x32d   :  { %v539_v41 = vrot.slane %v507_v8, %v2904_v12  ;;  %v953_v6 = vrot.slane %v923_v9, %v2904_v12 }
 0x331   :  { %v920_v20 = vpop.permute.xlu1 %919  ;;  %v504_v24 = vpop.permute.xlu0 %503 }
 0x332   :  { %v535_v17 = vrot.slane %v504_v24, %v2904_v12  ;;  %v949_v42 = vrot.slane %v920_v20, %v2904_v12 }
 0x334   :  { %v555_v37 = vsel %vm554_vm15, %v535_v17, %v553_v32  ;;  %v965_v63 = vsel %vm554_vm15, %v949_v42, %v964_v61 }
 0x335   :  { %v557_v60 = vsel %vm556_vm2, %v539_v41, %v555_v37  ;;  %v966_v19 = vsel %vm556_vm2, %v953_v6, %v965_v63 }
 0x336   :  { %v513_v30 = vpop.permute.xlu1 %512  ;;  %v929_v0 = vpop.permute.xlu0 %928 }
 0x337   :  { %v547_v50 = vrot.slane %v513_v30, %v2904_v12  ;;  %v961_v13 = vrot.slane %v929_v0, %v2904_v12 }
 0x33a   :  { %v510_v45 = vpop.permute.xlu1 %509 }
 0x33b   :  { %v543_v49 = vrot.slane %v510_v45, %v2904_v12 }
 0x33d   :  { %v559_v62 = vsel %vm558_vm3, %v543_v49, %v557_v60 }
 0x33e   :  { %v561_v4 = vsel %vm560_vm4, %v547_v50, %v559_v62 }
 0x33f   :  { %v926_v7 = vpop.permute.xlu1 %925  ;;  %v563_v3 = vsel %vm60_vm0, %v561_v4, -inf }
 0x340   :  { %v957_v8 = vrot.slane %v926_v7, %v2904_v12  ;;  %564 = vmax.xlane.f32.xlu1 %v563_v3 }
 0x342   :  { %v967_v20 = vsel %vm558_vm3, %v957_v8, %v966_v19 }
 0x343   :  { %v968_v23 = vsel %vm560_vm4, %v961_v13, %v967_v20 }
 0x344   :  { %v970_v24 = vsel %vm60_vm0, %v968_v23, -inf }
 0x345   :  { %971 = vmax.xlane.f32.xlu0 %v970_v24 }
 0x3cd   :  { %v2938_v25 = vpop.xlane.xlu1 %564 }
 0x3ce   :  { %v570_v9 = vrot.slane %v2938_v25, %v2773_v26  ;;  %v574_v27 = vrot.slane %v2938_v25, %v2795_v1  ;;  %v578_v33 = vrot.slane %v2938_v25, %v2805_v11  ;;  %v582_v45 = vrot.slane %v2938_v25, %v2802_v10 }
 0x3cf   :  { %v586_v60 = vrot.slane %v2938_v25, %v2813_v16  ;;  %v590_v4 = vrot.slane %v2938_v25, %v2810_v14 }
 0x3d0   :  { %v608_v15 = vsub.f32 %v2840_v38, %v574_v27  ;;  %v607_v17 = vsub.f32 %v2847_v43, %v570_v9  ;;  %v609_v46 = vsub.f32 %v2863_v51, %v578_v33  ;;  %v610_v62 = vsub.f32 %v2856_v47, %v582_v45 }
 0x3d1   :  { %v612_v13 = vsub.f32 %v2870_v53, %v590_v4 }
 0x3d2   :  { %v2946_v28 = vpop.xlane.xlu0 %971  ;;  %v617_v30 = vmul.f32 1.442695, %v608_v15  ;;  %v615_v32 = vmul.f32 1.442695, %v607_v17  ;;  %v619_v61 = vmul.f32 1.442695, %v609_v46 }
 0x3d3   :  { %v985_v29 = vrot.slane %v2946_v28, %v2805_v11  ;;  %v993_v31 = vrot.slane %v2946_v28, %v2813_v16  ;;  %v1001_v41 = vrot.slane %v2946_v28, %v2821_v22  ;;  %v621_v6 = vmul.f32 1.442695, %v610_v62 }
 0x3d4   :  { %2508 = vpow2.f32 %v617_v30  ;;  %v977_v19 = vrot.slane %v2946_v28, %v2773_v26  ;;  %v981_v23 = vrot.slane %v2946_v28, %v2795_v1  ;;  %v594_v30 = vrot.slane %v2938_v25, %v2821_v22 }
 0x3d5   :  { %v1016_v37 = vsub.f32 %v2863_v51, %v985_v29  ;;  %v1018_v42 = vsub.f32 %v2877_v55, %v993_v31  ;;  %2510 = vpow2.f32 %v615_v32  ;;  %v1020_v49 = vsub.f32 %v2895_v59, %v1001_v41 }
 0x3d6   :  { %v611_v51 = vsub.f32 %v2877_v55, %v586_v60  ;;  %v625_v55 = vmul.f32 1.442695, %v612_v13  ;;  %v1014_v24 = vsub.f32 %v2847_v43, %v977_v19  ;;  %v1015_v15 = vsub.f32 %v2840_v38, %v981_v23 }
 0x3d7   :  { %v1026_v39 = vmul.f32 1.442695, %v1016_v37  ;;  %v1030_v50 = vmul.f32 1.442695, %v1018_v42  ;;  %v1034_v63 = vmul.f32 1.442695, %v1020_v49  ;;  %v598_v32 = vrot.slane %v2938_v25, %v2818_v21 }
 0x3d8   :  { %v623_v8 = vmul.f32 1.442695, %v611_v51  ;;  %v1022_v17 = vmul.f32 1.442695, %v1014_v24  ;;  %v1024_v43 = vmul.f32 1.442695, %v1015_v15  ;;  %v613_v33 = vsub.f32 %v2895_v59, %v594_v30 }
 0x3d9   :  { %2512 = vpow2.f32 %v1026_v39  ;;  %v614_v39 = vsub.f32 %v2886_v57, %v598_v32  ;;  %v989_v41 = vrot.slane %v2946_v28, %v2802_v10  ;;  %v997_v59 = vrot.slane %v2946_v28, %v2810_v14 }
 0x3da   :  { %2514 = vpow2.f32 %v1030_v50  ;;  %v627_v37 = vmul.f32 1.442695, %v613_v33  ;;  %v1005_v49 = vrot.slane %v2946_v28, %v2818_v21 }
 0x3db   :  { %2516 = vpow2.f32 %v619_v61  ;;  %v629_v42 = vmul.f32 1.442695, %v614_v39  ;;  %v1017_v45 = vsub.f32 %v2856_v47, %v989_v41  ;;  %v1019_v50 = vsub.f32 %v2870_v53, %v997_v59 }
 0x3dc   :  { %2518 = vpow2.f32 %v1034_v63  ;;  %v1021_v61 = vsub.f32 %v2886_v57, %v1005_v49 }
 0x3dd   :  { %2520 = vpow2.f32 %v621_v6  ;;  %v1028_v60 = vmul.f32 1.442695, %v1017_v45  ;;  %v1032_v62 = vmul.f32 1.442695, %v1019_v50 }
 0x3de   :  { %v2965_v0 = vpop.eup %2508  ;;  %2522 = vpow2.f32 %v623_v8  ;;  %v1036_v63 = vmul.f32 1.442695, %v1021_v61 }
 0x3df   :  { %v2970_v7 = vpop.eup %2510  ;;  %643 = vperm.xlu1 %2493, %v2965_v0   ;;  %2524 = vpow2.f32 %v625_v55 }
 0x3e0   :  { %640 = vperm.xlu0 %2492, %v2970_v7   ;;  %2526 = vpow2.f32 %v1022_v17 }
 0x3e1   :  { %2528 = vpow2.f32 %v1024_v43 }
 0x3e2   :  { %2530 = vpow2.f32 %v627_v37 }
 0x3e3   :  { %v2974_v3 = vpop.eup %2512  ;;  %2532 = vpow2.f32 %v629_v42 }
 0x3e4   :  { %2496 = vset.pattern.permute.xlu0 %v2642_v34  ;;  %v2981_v20 = vpop.eup %2514  ;;  %2534 = vpow2.f32 %v1028_v60 }
 0x3e5   :  { %1053 = vperm.xlu0 %2496, %v2974_v3   ;;  %v2986_v9 = vpop.eup %2516  ;;  %2536 = vpow2.f32 %v1032_v62 }
 0x3e6   :  { %646 = vperm.xlu1 %2493, %v2986_v9   ;;  %v2990_v27 = vpop.eup %2518  ;;  %2538 = vpow2.f32 %v1036_v63 }
 0x3e7   :  { %v2993_v29 = vpop.eup %2520 }
 0x3e8   :  { %v2999_v31 = vpop.eup %2522 }
 0x3e9   :  { %1059 = vperm.xlu0 %2496, %v2981_v20   ;;  %v3006_v38 = vpop.eup %2524 }
 0x3ea   :  { %649 = vperm.xlu1 %2493, %v2993_v29   ;;  %v3012_v25 = vpop.eup %2526 }
 0x3eb   :  { %v3019_v46 = vpop.eup %2528 }
 0x3ec   :  { %v3026_v47 = vpop.eup %2530 }
 0x3ed   :  { %1065 = vperm.xlu0 %2496, %v2990_v27   ;;  %v3030_v4 = vpop.eup %2532 }
 0x3ee   :  { %652 = vperm.xlu1 %2493, %v2999_v31   ;;  %v3033_v53 = vpop.eup %2534 }
 0x3ef   :  { %v3037_v57 = vpop.eup %2536 }
 0x3f0   :  { %v3040_v28 = vpop.eup %2538 }
 0x3f1   :  { %2498 = vset.pattern.permute.xlu0 %v2643_v35 }
 0x3f2   :  { %655 = vperm.xlu1 %2493, %v3006_v38  }
 0x3f6   :  { %2494 = vset.pattern.permute.xlu1 %v2642_v34 }
 0x3f7   :  { %1047 = vperm.xlu1 %2494, %v3012_v25  }
 0x3fb   :  { %1050 = vperm.xlu1 %2494, %v3019_v46  }
 0x3ff   :  { %2495 = vset.pattern.permute.xlu1 %v2643_v35 }
 0x400   :  { %658 = vperm.xlu1 %2495, %v3026_v47  }
 0x404   :  { %661 = vperm.xlu1 %2495, %v3030_v4  }
 0x408   :  { %2497 = vset.pattern.permute.xlu1 %v2642_v34 }
 0x409   :  { %1056 = vperm.xlu1 %2497, %v3033_v53  }
 0x40d   :  { %1062 = vperm.xlu1 %2497, %v3037_v57  }
 0x411   :  { %1068 = vperm.xlu1 %2497, %v3040_v28  }
 0x415   :  { %2499 = vset.pattern.permute.xlu1 %v2643_v35 }
 0x45e   :  { %v644_v6 = vpop.permute.xlu1 %643 }
 0x45f   :  { %v641_v23 = vpop.permute.xlu0 %640  ;;  %v670_v15 = vrot.slane %v644_v6, %v2904_v12 }
 0x460   :  { %v666_v17 = vrot.slane %v641_v23, %v2904_v12 }
 0x462   :  { %v695_v37 = vsel %vm548_vm12, %v670_v15, %v666_v17 }
 0x464   :  { %v1054_v42 = vpop.permute.xlu0 %1053 }
 0x465   :  { %v647_v51 = vpop.permute.xlu1 %646  ;;  %v1081_v23 = vrot.slane %v1054_v42, %v2904_v12 }
 0x466   :  { %v674_v30 = vrot.slane %v647_v51, %v2904_v12 }
 0x468   :  { %v696_v41 = vsel %vm550_vm13, %v674_v30, %v695_v37 }
 0x469   :  { %v650_v8 = vpop.permute.xlu1 %649 }
 0x46a   :  { %v678_v43 = vrot.slane %v650_v8, %v2904_v12  ;;  %v1060_v8 = vpop.permute.xlu0 %1059 }
 0x46c   :  { %v697_v45 = vsel %vm552_vm14, %v678_v43, %v696_v41 }
 0x46d   :  { %v653_v13 = vpop.permute.xlu1 %652 }
 0x46e   :  { %v682_v32 = vrot.slane %v653_v13, %v2904_v12 }
 0x470   :  { %v698_v49 = vsel %vm554_vm15, %v682_v32, %v697_v45  ;;  %v1066_v32 = vpop.permute.xlu0 %1065 }
 0x471   :  { %v656_v19 = vpop.permute.xlu1 %655  ;;  %v1097_v41 = vrot.slane %v1066_v32, %v2904_v12 }
 0x472   :  { %v686_v39 = vrot.slane %v656_v19, %v2904_v12 }
 0x474   :  { %v699_v61 = vsel %vm556_vm2, %v686_v39, %v698_v49 }
 0x476   :  { %v1048_v55 = vpop.permute.xlu1 %1047 }
 0x477   :  { %v1073_v63 = vrot.slane %v1048_v55, %v2904_v12  ;;  %v1089_v55 = vrot.slane %v1060_v8, %v2904_v12 }
 0x47a   :  { %v1051_v24 = vpop.permute.xlu1 %1050 }
 0x47b   :  { %v1077_v50 = vrot.slane %v1051_v24, %v2904_v12 }
 0x47d   :  { %v1102_v13 = vsel %vm548_vm12, %v1077_v50, %v1073_v63 }
 0x47e   :  { %v1103_v17 = vsel %vm550_vm13, %v1081_v23, %v1102_v13 }
 0x47f   :  { %v659_v33 = vpop.permute.xlu1 %658 }
 0x480   :  { %v690_v59 = vrot.slane %v659_v33, %v2904_v12 }
 0x482   :  { %v700_v6 = vsel %vm558_vm3, %v690_v59, %v699_v61 }
 0x483   :  { %v662_v60 = vpop.permute.xlu1 %661 }
 0x484   :  { %v694_v62 = vrot.slane %v662_v60, %v2904_v12 }
 0x486   :  { %v701_v51 = vsel %vm560_vm4, %v694_v62, %v700_v6 }
 0x487   :  { %v703_v19 = vsel %vm60_vm0, %v701_v51, 0.0 }
 0x488   :  { %v1057_v15 = vpop.permute.xlu1 %1056  ;;  %704 = vadd.xlane.f32.xlu0 %v703_v19 }
 0x489   :  { %v1085_v24 = vrot.slane %v1057_v15, %v2904_v12 }
 0x48b   :  { %v1104_v30 = vsel %vm552_vm14, %v1085_v24, %v1103_v17 }
 0x48c   :  { %v1063_v43 = vpop.permute.xlu1 %1062  ;;  %v1105_v37 = vsel %vm554_vm15, %v1089_v55, %v1104_v30 }
 0x48d   :  { %v1093_v33 = vrot.slane %v1063_v43, %v2904_v12 }
 0x48f   :  { %v1106_v39 = vsel %vm556_vm2, %v1093_v33, %v1105_v37 }
 0x490   :  { %v1069_v42 = vpop.permute.xlu1 %1068  ;;  %v1107_v45 = vsel %vm558_vm3, %v1097_v41, %v1106_v39 }
 0x491   :  { %v1101_v59 = vrot.slane %v1069_v42, %v2904_v12 }
 0x493   :  { %v1108_v49 = vsel %vm560_vm4, %v1101_v59, %v1107_v45 }
 0x494   :  { %v1110_v50 = vsel %vm60_vm0, %v1108_v49, 0.0 }
 0x495   :  { %1111 = vadd.xlane.f32.xlu1 %v1110_v50 }
 0x515   :  { %v705_v60 = vpop.xlane.xlu0 %704 }
 0x516   :  { %v714_v61 = vrot.slane %v705_v60, %v2795_v1  ;;  %v710_v62 = vrot.slane %v705_v60, %v2773_v26  ;;  %v718_v63 = vrot.slane %v705_v60, %v2805_v11  ;;  %v722_v6 = vrot.slane %v705_v60, %v2802_v10 }
 0x517   :  { %v726_v51 = vrot.slane %v705_v60, %v2813_v16  ;;  %v730_v19 = vrot.slane %v705_v60, %v2810_v14  ;;  %v738_v55 = vrot.slane %v705_v60, %v2818_v21  ;;  %v734_v39 = vrot.slane %v705_v60, %v2821_v22 }
 0x518   :  { %2540 = vrcp.f32 %v714_v61 }
 0x519   :  { %2542 = vrcp.f32 %v710_v62 }
 0x51a   :  { %2544 = vrcp.f32 %v718_v63 }
 0x51b   :  { %2546 = vrcp.f32 %v722_v6 }
 0x51c   :  { %2548 = vrcp.f32 %v726_v51 }
 0x522   :  { %v2541_v8 = vpop.eup %2540  ;;  %v3081_v13 = vpop.xlane.xlu1 %1111 }
 0x523   :  { %v2543_v23 = vpop.eup %2542  ;;  %v750_v15 = vmul.f32 %v2541_v8, %v2965_v0  ;;  %v1121_v24 = vrot.slane %v3081_v13, %v2795_v1  ;;  %v1117_v32 = vrot.slane %v3081_v13, %v2773_v26  ;;  %v1137_v0 = vrot.slane %v3081_v13, %v2810_v14 }
 0x524   :  { %v2545_v17 = vpop.eup %2544  ;;  %v748_v30 = vmul.f32 %v2543_v23, %v2970_v7  ;;  %v1125_v45 = vrot.slane %v3081_v13, %v2805_v11  ;;  %v1141_v6 = vrot.slane %v3081_v13, %v2821_v22 }
 0x525   :  { %775 = vperm.xlu1 %2499, %v750_v15   ;;  %2550 = vrcp.f32 %v1121_v24  ;;  %v752_v43 = vmul.f32 %v2545_v17, %v2986_v9  ;;  %v2547_v33 = vpop.eup %2546 }
 0x526   :  { %772 = vperm.xlu0 %2498, %v748_v30   ;;  %2552 = vrcp.f32 %v730_v19  ;;  %v754_v7 = vmul.f32 %v2547_v33, %v2993_v29  ;;  %v2549_v37 = vpop.eup %2548 }
 0x527   :  { %2554 = vrcp.f32 %v738_v55  ;;  %v756_v41 = vmul.f32 %v2549_v37, %v2999_v31  ;;  %v1129_v31 = vrot.slane %v3081_v13, %v2802_v10 }
 0x528   :  { %2556 = vrcp.f32 %v1117_v32 }
 0x529   :  { %778 = vperm.xlu1 %2499, %v752_v43   ;;  %2558 = vrcp.f32 %v1137_v0 }
 0x52a   :  { %2501 = vset.pattern.permute.xlu0 %v2642_v34  ;;  %2560 = vrcp.f32 %v734_v39 }
 0x52b   :  { %2562 = vrcp.f32 %v1125_v45 }
 0x52c   :  { %2564 = vrcp.f32 %v1129_v31 }
 0x52d   :  { %781 = vperm.xlu1 %2499, %v754_v7  }
 0x52f   :  { %v2551_v9 = vpop.eup %2550 }
 0x530   :  { %v2553_v42 = vpop.eup %2552  ;;  %v1157_v59 = vmul.f32 %v2551_v9, %v3019_v46 }
 0x531   :  { %784 = vperm.xlu1 %2499, %v756_v41   ;;  %v2555_v49 = vpop.eup %2554  ;;  %v758_v29 = vmul.f32 %v2553_v42, %v3006_v38  ;;  %v1133_v38 = vrot.slane %v3081_v13, %v2813_v16 }
 0x532   :  { %1182 = vperm.xlu0 %2501, %v1157_v59   ;;  %v2557_v50 = vpop.eup %2556  ;;  %v762_v60 = vmul.f32 %v2555_v49, %v3030_v4 }
 0x533   :  { %v2559_v46 = vpop.eup %2558  ;;  %v1155_v61 = vmul.f32 %v2557_v50, %v3012_v25  ;;  %2566 = vrcp.f32 %v1133_v38 }
 0x534   :  { %v2561_v62 = vpop.eup %2560  ;;  %v1165_v4 = vmul.f32 %v2559_v46, %v3037_v57  ;;  %2568 = vrcp.f32 %v1141_v6  ;;  %v1145_v57 = vrot.slane %v3081_v13, %v2818_v21 }
 0x535   :  { %787 = vperm.xlu1 %2499, %v758_v29   ;;  %v760_v63 = vmul.f32 %v2561_v62, %v3026_v47  ;;  %v2563_v25 = vpop.eup %2562 }
 0x536   :  { %2504 = vset.pattern.permute.xlu0 %v2643_v35  ;;  %v1159_v51 = vmul.f32 %v2563_v25, %v2974_v3  ;;  %v2565_v47 = vpop.eup %2564  ;;  %2570 = vrcp.f32 %v1145_v57 }
 0x537   :  { %793 = vperm.xlu0 %2504, %v762_v60   ;;  %v1161_v8 = vmul.f32 %v2565_v47, %v3033_v53 }
 0x539   :  { %2500 = vset.pattern.permute.xlu1 %v2642_v34 }
 0x53a   :  { %1179 = vperm.xlu1 %2500, %v1155_v61  }
 0x53b   :  { %2505 = vset.pattern.permute.xlu0 %v2642_v34 }
 0x53c   :  { %1194 = vperm.xlu0 %2505, %v1165_v4  }
 0x53d   :  { %v2567_v19 = vpop.eup %2566 }
 0x53e   :  { %2502 = vset.pattern.permute.xlu1 %v2643_v35  ;;  %v1163_v23 = vmul.f32 %v2567_v19, %v2981_v20 }
 0x53f   :  { %790 = vperm.xlu1 %2502, %v760_v63  }
 0x540   :  { %1241 = vrot.lane.b32.xlu0 %v2741_v5, %s2644_s1  ;;  %v2569_v5 = vpop.eup %2568 }
 0x541   :  { %2506 = vset.pattern.permute.xlu0 %v2643_v35  ;;  %v1167_v15 = vmul.f32 %v2569_v5, %v2990_v27  ;;  %v2571_v13 = vpop.eup %2570 }
 0x542   :  { %v1169_v24 = vmul.f32 %v2571_v13, %v3040_v28 }
 0x543   :  { %2503 = vset.pattern.permute.xlu1 %v2642_v34 }
 0x544   :  { %1185 = vperm.xlu1 %2503, %v1159_v51  }
 0x548   :  { %1188 = vperm.xlu1 %2503, %v1161_v8  }
 0x54c   :  { %1191 = vperm.xlu1 %2503, %v1163_v23  }
 0x550   :  { %1197 = vperm.xlu1 %2503, %v1167_v15  }
 0x554   :  { %1200 = vperm.xlu1 %2503, %v1169_v24  }
 0x558   :  { %2507 = vset.pattern.permute.xlu1 %v2643_v35 }
 0x5a4   :  { %v776_v34 = vpop.permute.xlu1 %775 }
 0x5a5   :  { %v773_v30 = vpop.permute.xlu0 %772  ;;  %v802_v20 = vrot.slane %v776_v34, %v2904_v12 }
 0x5a6   :  { %v798_v33 = vrot.slane %v773_v30, %v2904_v12  ;;  %v1332_v30 = vld [vmem:[%s3351_s6 + $0x8] sm:$0xff] }
 0x5a8   :  { %v779_v3 = vpop.permute.xlu1 %778  ;;  %v827_v35 = vsel %vm548_vm12, %v802_v20, %v798_v33  ;;  %v1333_v20 = vld [vmem:[%s3351_s6 + $0x10] sm:$0xff]  ;;  %v1334_v33 = vld [vmem:[%s3351_s6 + $0x18] sm:$0xff] }
 0x5a9   :  { %v806_v27 = vrot.slane %v779_v3, %v2904_v12 }
 0x5ab   :  { %v828_v39 = vsel %vm550_vm13, %v806_v27, %v827_v35  ;;  %v2467_v27 = vpack.c.bf16 %v1334_v33, %v1333_v20 }
 0x5ac   :  { %v782_v17 = vpop.permute.xlu1 %781 }
 0x5ad   :  { %v810_v28 = vrot.slane %v782_v17, %v2904_v12  ;;  %v1331_v17 = vld [vmem:[%s3351_s6] sm:$0xff]  ;;  %s2647_s6 = smov 8  }
 0x5af   :  { %v829_v41 = vsel %vm552_vm14, %v810_v28, %v828_v39 }
 0x5b0   :  { %v785_v53 = vpop.permute.xlu1 %784 }
 0x5b1   :  { %v1183_v55 = vpop.permute.xlu0 %1182  ;;  %v814_v7 = vrot.slane %v785_v53, %v2904_v12  ;;  %v2645_v53 = vmov 0.0|0.0  }
 0x5b2   :  { %v1209_v63 = vrot.slane %v1183_v55, %v2904_v12  ;;  %v2464_v55 = vpack.c.bf16 %v1332_v30, %v1331_v17 }
 0x5b3   :  { %v830_v59 = vsel %vm554_vm15, %v814_v7, %v829_v41  ;;  %v2325_v7 = vld [vmem:[%s3350_s5] ss:$0 sm:$0xff] }
 0x5b4   :  { %v788_v43 = vpop.permute.xlu1 %787  ;;  %v2326_v41 = vld [vmem:[%s3352_s7] ss:$0 sm:$0xff]  ;;  %s2648_s7 = smov 120  }
 0x5b5   :  { %v818_v37 = vrot.slane %v788_v43, %v2904_v12 }
 0x5b6   :  { %v794_v32 = vpop.permute.xlu0 %793 }
 0x5b7   :  { %v831_v49 = vsel %vm556_vm2, %v818_v37, %v830_v59  ;;  %v826_v29 = vrot.slane %v794_v32, %v2904_v12 }
 0x5b9   :  { %v1180_v0 = vpop.permute.xlu1 %1179 }
 0x5ba   :  { %v1205_v38 = vrot.slane %v1180_v0, %v2904_v12 }
 0x5bb   :  { %v1195_v9 = vpop.permute.xlu0 %1194 }
 0x5bc   :  { %v1234_v57 = vsel %vm548_vm12, %v1209_v63, %v1205_v38  ;;  %v1225_v5 = vrot.slane %v1195_v9, %v2904_v12 }
 0x5be   :  { %v791_v42 = vpop.permute.xlu1 %790 }
 0x5bf   :  { %v822_v45 = vrot.slane %v791_v42, %v2904_v12  ;;  %v1242_v31 = vpop.permute.xlu0 %1241 }
 0x5c1   :  { %v832_v50 = vsel %vm558_vm3, %v822_v45, %v831_v49  ;;  %v1540_v49 = vld [vmem:[%s3353_s8] sm:$0xff] }
 0x5c2   :  { %v833_v60 = vsel %vm560_vm4, %v826_v29, %v832_v50 }
 0x5c3   :  { %v1186_v46 = vpop.permute.xlu1 %1185  ;;  %2408 = vmatmul.mubr.msk.f32.vlgmr.msra.gmra.mrb[2].mxu0 %vm60_vm0, %v833_v60 }
 0x5c4   :  { %2411 = vmatpush3.msra.mxu0 %v1242_v31  ;;  %2412 = vmatprep.mubr.msk.f32.mxu0 %vm2637_vm1, %v2636_v2  ;;  %v1213_v62 = vrot.slane %v1186_v46, %v2904_v12 }
 0x5c5   :  { %2463 = vmatprep.subr.bf16.mxu0 %v2645_v53 }
 0x5c6   :  { %v1235_v51 = vsel %vm550_vm13, %v1213_v62, %v1234_v57 }
 0x5c7   :  { %v1189_v61 = vpop.permute.xlu1 %1188 }
 0x5c8   :  { %v1217_v6 = vrot.slane %v1189_v61, %v2904_v12 }
 0x5ca   :  { %v1236_v8 = vsel %vm552_vm14, %v1217_v6, %v1235_v51 }
 0x5cb   :  { %v1192_v4 = vpop.permute.xlu1 %1191 }
 0x5cc   :  { %v1221_v25 = vrot.slane %v1192_v4, %v2904_v12 }
 0x5ce   :  { %v1237_v19 = vsel %vm554_vm15, %v1221_v25, %v1236_v8 }
 0x5cf   :  { %v1198_v47 = vpop.permute.xlu1 %1197  ;;  %v1238_v13 = vsel %vm556_vm2, %v1225_v5, %v1237_v19 }
 0x5d0   :  { %v1229_v23 = vrot.slane %v1198_v47, %v2904_v12 }
 0x5d2   :  { %v1239_v34 = vsel %vm558_vm3, %v1229_v23, %v1238_v13 }
 0x5d3   :  { %v1201_v15 = vpop.permute.xlu1 %1200 }
 0x5d4   :  { %v1233_v24 = vrot.slane %v1201_v15, %v2904_v12 }
 0x5d6   :  { %v1240_v3 = vsel %vm560_vm4, %v1233_v24, %v1239_v34 }
 0x5d7   :  { %2413 = vmatmul.mubr.msk.f32.vlgmr.msra.gmra.mrb[4].mxu0 %vm60_vm0, %v1240_v3 }
 0x5d8   :  { %2423 = vmatprep.mubr.msk.f32.mxu0 %vm2637_vm1, %v2636_v2  ;;  %2465 = vmatpush3.bf16.msra.mxu0 %v2464_v55 }
 0x5d9   :  { %2466 = vmatprep.subr.bf16.mxu0 %v2645_v53 }
 0x5dc   :  { %2468 = vmatpush3.bf16.msra.mxu0 %v2467_v27 }
 0x5dd   :  { %2426 = vmatprep.subr.mxu0 %v1540_v49 }
 0x696   :  { %v902_v43 = vpop.f32.mrb[2].mxu0 }
 0x697   :  { %v2409_v32 = vpop.f32.mrb[3].mxu0 }
 0x6aa   :  { %v1312_v0 = vpop.f32.mrb[4].mxu0 }
 0x6ab   :  { %1317 = vrot.lane.b32.xlu1 %v1312_v0, %s2646_s0  ;;  %v2414_v28 = vpop.f32.mrb[5].mxu0 }
 0x71d   :  { %v1318_v35 = vpop.permute.xlu1 %1317 }
 0x71e   :  { %v1321_v37 = vsel %vm1320_vm5, %v902_v43, %v1318_v35 }
 0x71f   :  { %v1329_v39 = vadd.f32 %v2325_v7, %v1321_v37 }
 0x721   :  { %v1330_v9 = vmax.f32 %v1329_v39, 0.0 }
 0x723   :  { %2424 = vmatmul.mubr.msk.f32.vlgmr.msra.gmra.mrb[6].mxu0 %vm287_vm11, %v1330_v9 }
 0x724   :  { %2427 = vmatpush3.msra.mxu0 %v1540_v49 }
 0x7f6   :  { %v1411_v42 = vpop.f32.mrb[6].mxu0 }
 0x7f7   :  { %v1412_v59 = vadd.f32 %v2326_v41, %v1411_v42  ;;  %v2425_v45 = vpop.f32.mrb[7].mxu0 }
 0x7f9   :  { %1505 = vrot.lane.b32.xlu0 %v1412_v59, %s2647_s6  ;;  %2441 = vmatpush3.msra.mxu1 %v1412_v59  ;;  %v1423_v29 = vrot.slane %v1412_v59, %v2763_v18  ;;  %v1416_v50 = vcombine.high %v1412_v59, %v1412_v59 }
 0x7fa   :  { %2445 = vmatprep.subr.mxu1 %v2636_v2 }
 0x7fb   :  { %v1431_v60 = vcombine.high %v1423_v29, %v1423_v29  ;;  %v1430_v31 = vrot.slane %v1416_v50, %v2763_v18  ;;  %v1439_v46 = vrot.slane %v1423_v29, %v2763_v18 }
 0x7fd   :  { %v1453_v61 = vrot.slane %v1431_v60, %v2763_v18  ;;  %v1432_v38 = vcombine.high %v1430_v31, %v1430_v31  ;;  %v1461_v62 = vcombine.high %v1439_v46, %v1439_v46  ;;  %v1446_v63 = vrot.slane %v1430_v31, %v2763_v18 }
 0x7fe   :  { %v1468_v25 = vrot.slane %v1439_v46, %v2773_v26 }
 0x7ff   :  { %v1463_v4 = vcombine.high %v1453_v61, %v1453_v61  ;;  %v1460_v6 = vrot.slane %v1432_v38, %v2763_v18  ;;  %v1472_v57 = vrot.slane %v1453_v61, %v2773_v26  ;;  %v1476_v51 = vrot.slane %v1461_v62, %v2773_v26 }
 0x800   :  { %v1484_v13 = vrot.slane %v1446_v63, %v2773_v26  ;;  %v1462_v34 = vcombine.high %v1446_v63, %v1446_v63 }
 0x801   :  { %v1480_v47 = vrot.slane %v1463_v4, %v2773_v26  ;;  %v1488_v24 = vrot.slane %v1460_v6, %v2773_v26  ;;  %v1464_v3 = vcombine.high %v1460_v6, %v1460_v6 }
 0x802   :  { %v1492_v33 = vrot.slane %v1462_v34, %v2773_v26 }
 0x803   :  { %v1496_v27 = vrot.slane %v1464_v3, %v2773_v26 }
 0x86b   :  { %v1506_v8 = vpop.permute.xlu0 %1505 }
 0x86c   :  { %v1508_v19 = vadd.f32 %v1506_v8, %v1468_v25  ;;  %v1509_v23 = vadd.f32 %v1506_v8, %v1472_v57  ;;  %v1510_v5 = vadd.f32 %v1506_v8, %v1476_v51  ;;  %v1511_v15 = vadd.f32 %v1506_v8, %v1480_v47 }
 0x86d   :  { %v1512_v30 = vadd.f32 %v1506_v8, %v1484_v13  ;;  %v1513_v53 = vadd.f32 %v1506_v8, %v1488_v24  ;;  %v1514_v0 = vadd.f32 %v1506_v8, %v1492_v33  ;;  %v1515_v28 = vadd.f32 %v1506_v8, %v1496_v27 }
 0x86e   :  { %vm1516_vm6 = vcmp.gt.f32.partialorder %v1508_v19, 0.0  ;;  %v1524_v18 = vmul.f32 0.2, %v1508_v19  ;;  %vm1517_vm7 = vcmp.gt.f32.partialorder %v1509_v23, 0.0  ;;  %v1525_v17 = vmul.f32 0.2, %v1509_v23 }
 0x86f   :  { %v1526_v32 = vmul.f32 0.2, %v1510_v5  ;;  %v1527_v20 = vmul.f32 0.2, %v1511_v15  ;;  %vm1518_vm8 = vcmp.gt.f32.partialorder %v1510_v5, 0.0  ;;  %vm1519_vm9 = vcmp.gt.f32.partialorder %v1511_v15, 0.0 }
 0x870   :  { %v1532_v55 = vsel %vm1516_vm6, %v1508_v19, %v1524_v18  ;;  %v1533_v43 = vsel %vm1517_vm7, %v1509_v23, %v1525_v17  ;;  %v1528_v37 = vmul.f32 0.2, %v1512_v30  ;;  %v1529_v39 = vmul.f32 0.2, %v1513_v53 }
 0x871   :  { %1549 = vrot.lane.b32.xlu1 %v1532_v55, %s2648_s7  ;;  %1551 = vrot.lane.b32.xlu0 %v1533_v43, %s2648_s7  ;;  %v1534_v7 = vsel %vm1518_vm8, %v1510_v5, %v1526_v32  ;;  %v1535_v35 = vsel %vm1519_vm9, %v1511_v15, %v1527_v20  ;;  %vm1520_vm10 = vcmp.gt.f32.partialorder %v1512_v30, 0.0  ;;  %vm1521_vm11 = vcmp.gt.f32.partialorder %v1513_v53, 0.0 }
 0x872   :  { %v1536_v9 = vsel %vm1520_vm10, %v1512_v30, %v1528_v37  ;;  %v1537_v41 = vsel %vm1521_vm11, %v1513_v53, %v1529_v39  ;;  %v1530_v42 = vmul.f32 0.2, %v1514_v0  ;;  %v1531_v59 = vmul.f32 0.2, %v1515_v28 }
 0x873   :  { %vm1522_vm5 = vcmp.gt.f32.partialorder %v1514_v0, 0.0  ;;  %vm1523_vm6 = vcmp.gt.f32.partialorder %v1515_v28, 0.0 }
 0x874   :  { %v1538_v45 = vsel %vm1522_vm5, %v1514_v0, %v1530_v42  ;;  %v1539_v49 = vsel %vm1523_vm6, %v1515_v28, %v1531_v59 }
 0x875   :  { %1553 = vrot.lane.b32.xlu1 %v1534_v7, %s2648_s7  ;;  %1555 = vrot.lane.b32.xlu0 %v1535_v35, %s2648_s7 }
 0x879   :  { %1557 = vrot.lane.b32.xlu1 %v1536_v9, %s2648_s7  ;;  %1559 = vrot.lane.b32.xlu0 %v1537_v41, %s2648_s7 }
 0x87d   :  { %1561 = vrot.lane.b32.xlu1 %v1538_v45, %s2648_s7  ;;  %1563 = vrot.lane.b32.xlu0 %v1539_v49, %s2648_s7 }
 0x8e3   :  { %v1550_v29 = vpop.permute.xlu1 %1549  ;;  %v1552_v50 = vpop.permute.xlu0 %1551 }
 0x8e4   :  { %2428 = vmatprep.mubr.msk.f32.mxu0 %vm60_vm0, %v1550_v29 }
 0x8e5   :  { %2429 = vmatmul.mubr.msk.f32.vlgmr.msra.gmra.mrb[8].mxu0 %vm60_vm0, %v1552_v50 }
 0x8e7   :  { %v1554_v60 = vpop.permute.xlu1 %1553  ;;  %v1556_v31 = vpop.permute.xlu0 %1555 }
 0x8e8   :  { %2431 = vmatprep.mubr.msk.f32.mxu0 %vm60_vm0, %v1554_v60 }
 0x8e9   :  { %2432 = vmatmul.mubr.msk.f32.gmra.mrb[10].mxu0 %vm60_vm0, %v1556_v31 }
 0x8eb   :  { %v1558_v46 = vpop.permute.xlu1 %1557  ;;  %v1560_v61 = vpop.permute.xlu0 %1559 }
 0x8ec   :  { %2434 = vmatprep.mubr.msk.f32.mxu0 %vm60_vm0, %v1558_v46 }
 0x8ed   :  { %2435 = vmatmul.mubr.msk.f32.gmra.mrb[12].mxu0 %vm60_vm0, %v1560_v61 }
 0x8ef   :  { %v1562_v38 = vpop.permute.xlu1 %1561  ;;  %v1564_v62 = vpop.permute.xlu0 %1563 }
 0x8f0   :  { %2437 = vmatprep.mubr.msk.f32.mxu0 %vm60_vm0, %v1562_v38 }
 0x8f1   :  { %2438 = vmatmul.mubr.msk.f32.gmra.mrb[14].mxu0 %vm60_vm0, %v1564_v62 }
 0x9b8   :  { %v2430_v4 = vpop.f32.mrb[8].mxu0 }
 0x9b9   :  { %v1687_v63 = vadd.f32 %v2430_v4, %v2837_v36  ;;  %v1647_v6 = vpop.f32.mrb[9].mxu0 }
 0x9ba   :  { %v1686_v25 = vadd.f32 %v1647_v6, %v2842_v40 }
 0x9bb   :  { %1706 = vperm.xlu0 %2506, %v1687_v63  }
 0x9bc   :  { %1703 = vperm.xlu1 %2507, %v1686_v25   ;;  %v2433_v57 = vpop.f32.mrb[10].mxu0 }
 0x9bd   :  { %v1689_v51 = vadd.f32 %v2433_v57, %v2849_v44  ;;  %v1657_v47 = vpop.f32.mrb[11].mxu0 }
 0x9be   :  { %v1688_v23 = vadd.f32 %v1657_v47, %v2858_v48 }
 0x9c0   :  { %1712 = vperm.xlu1 %2507, %v1689_v51   ;;  %v2436_v8 = vpop.f32.mrb[12].mxu0 }
 0x9c1   :  { %v1667_v19 = vpop.f32.mrb[13].mxu0  ;;  %v1691_v13 = vadd.f32 %v2436_v8, %v2865_v52 }
 0x9c2   :  { %v1690_v5 = vadd.f32 %v1667_v19, %v2872_v54 }
 0x9c4   :  { %1709 = vperm.xlu1 %2507, %v1688_v23   ;;  %1715 = vperm.xlu0 %2506, %v1690_v5   ;;  %v2439_v15 = vpop.f32.mrb[14].mxu0 }
 0x9c5   :  { %v1677_v36 = vpop.f32.mrb[15].mxu0  ;;  %v1693_v44 = vadd.f32 %v2439_v15, %v2881_v56 }
 0x9c6   :  { %v1692_v40 = vadd.f32 %v1677_v36, %v2888_v58 }
 0x9c8   :  { %1718 = vperm.xlu1 %2507, %v1691_v13   ;;  %1721 = vperm.xlu0 %2506, %v1692_v40  }
 0x9cc   :  { %1724 = vperm.xlu1 %2507, %v1693_v44  }
 0xa3a   :  { %v1707_v34 = vpop.permute.xlu0 %1706 }
 0xa3b   :  { %v1704_v24 = vpop.permute.xlu1 %1703  ;;  %v1733_v48 = vrot.slane %v1707_v34, %v2904_v12 }
 0xa3c   :  { %v1729_v54 = vrot.slane %v1704_v24, %v2904_v12 }
 0xa3e   :  { %v1758_v52 = vsel %vm548_vm12, %v1733_v48, %v1729_v54 }
 0xa3f   :  { %v1713_v3 = vpop.permute.xlu1 %1712 }
 0xa40   :  { %v1741_v58 = vrot.slane %v1713_v3, %v2904_v12 }
 0xa43   :  { %v1710_v18 = vpop.permute.xlu1 %1709  ;;  %v1716_v17 = vpop.permute.xlu0 %1715 }
 0xa44   :  { %v1737_v30 = vrot.slane %v1710_v18, %v2904_v12  ;;  %v1745_v56 = vrot.slane %v1716_v17, %v2904_v12 }
 0xa46   :  { %v1759_v53 = vsel %vm550_vm13, %v1737_v30, %v1758_v52 }
 0xa47   :  { %v1760_v55 = vsel %vm552_vm14, %v1741_v58, %v1759_v53  ;;  %v1719_v43 = vpop.permute.xlu1 %1718  ;;  %v1722_v32 = vpop.permute.xlu0 %1721 }
 0xa48   :  { %v1761_v20 = vsel %vm554_vm15, %v1745_v56, %v1760_v55  ;;  %v1749_v33 = vrot.slane %v1719_v43, %v2904_v12  ;;  %v1753_v27 = vrot.slane %v1722_v32, %v2904_v12 }
 0xa4a   :  { %v1762_v0 = vsel %vm556_vm2, %v1749_v33, %v1761_v20 }
 0xa4b   :  { %v1725_v28 = vpop.permute.xlu1 %1724  ;;  %v1763_v35 = vsel %vm558_vm3, %v1753_v27, %v1762_v0 }
 0xa4c   :  { %v1757_v7 = vrot.slane %v1725_v28, %v2904_v12 }
 0xa4e   :  { %v1764_v37 = vsel %vm560_vm4, %v1757_v7, %v1763_v35 }
 0xa4f   :  { %v1766_v39 = vsel %vm60_vm0, %v1764_v37, -inf }
 0xa50   :  { %1767 = vmax.xlane.f32.xlu0 %v1766_v39 }
 0xadd   :  { %v1768_v9 = vpop.xlane.xlu0 %1767 }
 0xade   :  { %v1773_v41 = vrot.slane %v1768_v9, %v2773_v26  ;;  %v1777_v42 = vrot.slane %v1768_v9, %v2795_v1  ;;  %v1781_v59 = vrot.slane %v1768_v9, %v2805_v11  ;;  %v1785_v50 = vrot.slane %v1768_v9, %v2802_v10 }
 0xadf   :  { %v1789_v46 = vrot.slane %v1768_v9, %v2813_v16  ;;  %v1793_v62 = vrot.slane %v1768_v9, %v2810_v14 }
 0xae0   :  { %v1810_v45 = vsub.f32 %v1686_v25, %v1773_v41  ;;  %v1811_v49 = vsub.f32 %v1687_v63, %v1777_v42  ;;  %v1812_v60 = vsub.f32 %v1688_v23, %v1781_v59  ;;  %v1813_v61 = vsub.f32 %v1689_v51, %v1785_v50 }
 0xae1   :  { %v1814_v4 = vsub.f32 %v1690_v5, %v1789_v46  ;;  %v1797_v63 = vrot.slane %v1768_v9, %v2821_v22  ;;  %v1815_v25 = vsub.f32 %v1691_v13, %v1793_v62  ;;  %v1801_v51 = vrot.slane %v1768_v9, %v2818_v21 }
 0xae2   :  { %v1818_v29 = vmul.f32 1.442695, %v1810_v45  ;;  %v1820_v31 = vmul.f32 1.442695, %v1811_v49  ;;  %v1822_v38 = vmul.f32 1.442695, %v1812_v60 }
 0xae3   :  { %v1824_v6 = vmul.f32 1.442695, %v1813_v61  ;;  %v1826_v47 = vmul.f32 1.442695, %v1814_v4  ;;  %v1816_v19 = vsub.f32 %v1692_v40, %v1797_v63  ;;  %v1828_v23 = vmul.f32 1.442695, %v1815_v25 }
 0xae4   :  { %2572 = vpow2.f32 %v1818_v29  ;;  %v1817_v5 = vsub.f32 %v1693_v44, %v1801_v51 }
 0xae5   :  { %2574 = vpow2.f32 %v1820_v31  ;;  %v1830_v36 = vmul.f32 1.442695, %v1816_v19 }
 0xae6   :  { %2576 = vpow2.f32 %v1822_v38  ;;  %v1832_v13 = vmul.f32 1.442695, %v1817_v5 }
 0xae7   :  { %2578 = vpow2.f32 %v1824_v6 }
 0xae8   :  { %2580 = vpow2.f32 %v1826_v47 }
 0xae9   :  { %2582 = vpow2.f32 %v1828_v23 }
 0xaea   :  { %2584 = vpow2.f32 %v1830_v36 }
 0xaeb   :  { %2586 = vpow2.f32 %v1832_v13 }
 0xaee   :  { %v3238_v57 = vpop.eup %2572 }
 0xaef   :  { %1843 = vperm.xlu1 %2507, %v3238_v57   ;;  %v2575_v8 = vpop.eup %2574 }
 0xaf0   :  { %v3243_v15 = vpop.eup %2576 }
 0xaf1   :  { %v3246_v24 = vpop.eup %2578 }
 0xaf2   :  { %v3249_v34 = vpop.eup %2580 }
 0xaf3   :  { %1846 = vperm.xlu1 %2507, %v2575_v8   ;;  %v3252_v40 = vpop.eup %2582 }
 0xaf4   :  { %v3255_v3 = vpop.eup %2584 }
 0xaf5   :  { %v3258_v44 = vpop.eup %2586 }
 0xaf7   :  { %1849 = vperm.xlu1 %2507, %v3243_v15  }
 0xafb   :  { %1852 = vperm.xlu1 %2507, %v3246_v24  }
 0xaff   :  { %1855 = vperm.xlu1 %2507, %v3249_v34  }
 0xb03   :  { %1858 = vperm.xlu1 %2507, %v3252_v40  }
 0xb07   :  { %1861 = vperm.xlu1 %2507, %v3255_v3  }
 0xb0b   :  { %1864 = vperm.xlu1 %2507, %v3258_v44  }
 0xb6e   :  { %v1844_v48 = vpop.permute.xlu1 %1843 }
 0xb6f   :  { %v1869_v56 = vrot.slane %v1844_v48, %v2904_v12 }
 0xb72   :  { %v1847_v54 = vpop.permute.xlu1 %1846 }
 0xb73   :  { %v1873_v58 = vrot.slane %v1847_v54, %v2904_v12 }
 0xb75   :  { %v1898_v20 = vsel %vm548_vm12, %v1873_v58, %v1869_v56 }
 0xb76   :  { %v1850_v18 = vpop.permute.xlu1 %1849 }
 0xb77   :  { %v1877_v53 = vrot.slane %v1850_v18, %v2904_v12 }
 0xb79   :  { %v1899_v27 = vsel %vm550_vm13, %v1877_v53, %v1898_v20 }
 0xb7a   :  { %v1853_v17 = vpop.permute.xlu1 %1852 }
 0xb7b   :  { %v1881_v55 = vrot.slane %v1853_v17, %v2904_v12 }
 0xb7d   :  { %v1900_v28 = vsel %vm552_vm14, %v1881_v55, %v1899_v27 }
 0xb7e   :  { %v1856_v30 = vpop.permute.xlu1 %1855 }
 0xb7f   :  { %v1885_v43 = vrot.slane %v1856_v30, %v2904_v12 }
 0xb81   :  { %v1901_v7 = vsel %vm554_vm15, %v1885_v43, %v1900_v28  ;;  %v2336_v43 = vld [vmem:[%s3354_s9] ss:$0 sm:$0xff] }
 0xb82   :  { %v1859_v52 = vpop.permute.xlu1 %1858 }
 0xb83   :  { %v1889_v33 = vrot.slane %v1859_v52, %v2904_v12 }
 0xb85   :  { %v1902_v37 = vsel %vm556_vm2, %v1889_v33, %v1901_v7 }
 0xb86   :  { %v1862_v32 = vpop.permute.xlu1 %1861 }
 0xb87   :  { %v1893_v0 = vrot.slane %v1862_v32, %v2904_v12 }
 0xb89   :  { %v1903_v9 = vsel %vm558_vm3, %v1893_v0, %v1902_v37  ;;  %v2128_v37 = vld [vmem:[%s3355_s10] sm:$0xff] }
 0xb8a   :  { %v1865_v35 = vpop.permute.xlu1 %1864 }
 0xb8b   :  { %v1897_v39 = vrot.slane %v1865_v35, %v2904_v12 }
 0xb8d   :  { %v1904_v41 = vsel %vm560_vm4, %v1897_v39, %v1903_v9 }
 0xb8e   :  { %v1906_v42 = vsel %vm60_vm0, %v1904_v41, 0.0 }
 0xb8f   :  { %1907 = vadd.xlane.f32.xlu0 %v1906_v42 }
 0xc1c   :  { %v1908_v59 = vpop.xlane.xlu0 %1907 }
 0xc1d   :  { %v1917_v45 = vrot.slane %v1908_v59, %v2795_v1  ;;  %v1913_v49 = vrot.slane %v1908_v59, %v2773_v26  ;;  %v1921_v29 = vrot.slane %v1908_v59, %v2805_v11  ;;  %v1925_v50 = vrot.slane %v1908_v59, %v2802_v10 }
 0xc1e   :  { %v1929_v60 = vrot.slane %v1908_v59, %v2813_v16  ;;  %v1933_v38 = vrot.slane %v1908_v59, %v2810_v14  ;;  %v1937_v26 = vrot.slane %v1908_v59, %v2821_v22  ;;  %v1941_v16 = vrot.slane %v1908_v59, %v2818_v21  ;;  %v2210_v59 = vld [vmem:[%s3357_s12] sm:$0xff] }
 0xc1f   :  { %2588 = vrcp.f32 %v1917_v45  ;;  %v2338_v45 = vld [vmem:[%s3356_s11] ss:$0 sm:$0xff]  ;;  %s2649_s11 = smov [#allocation2]  }
 0xc20   :  { %2590 = vrcp.f32 %v1913_v49  ;;  %s2305_s12 = sshll.u32 %s2649_s11, 4  ;;  %s2306_s12 = int_to_ptr.vmem [resolvable:$true] %s2305_s12 }
 0xc21   :  { %2592 = vrcp.f32 %v1921_v29  ;;  %s2612_s27 = scalar_lea.vmem %s2306_s12, 128  ;;  %p2617_p1 = scmp.lt.s32.totalorder %s2306_s12, %s2306_s12 }
 0xc22   :  { %2594 = vrcp.f32 %v1925_v50  ;;  %p2613_p0 = scmp.ne.s32.totalorder %s2306_s12, %s2612_s27  ;;  %p2618_p2 = scmp.lt.s32.totalorder %s2612_s27, %s2612_s27 }
 0xc23   :  { %2596 = vrcp.f32 %v1929_v60 }
 0xc24   :  { %2598 = vrcp.f32 %v1933_v38  ;;  %p2619_p3 = por %p2618_p2, %p2617_p1 }
 0xc25   :  { %2600 = vrcp.f32 %v1937_v26 }
 0xc26   :  { %2602 = vrcp.f32 %v1941_v16  ;;  %p2620_p4 = pnand %p2619_p3, %p2613_p0 }
 0xc29   :  { %v2589_v31 = vpop.eup %2588 }
 0xc2a   :  { %v2591_v46 = vpop.eup %2590  ;;  %v1953_v61 = vmul.f32 %v2589_v31, %v2575_v8  ;;  %v2340_v31 = vld [vmem:[%s3358_s13] ss:$0 sm:$0xff] }
 0xc2b   :  { %v1951_v1 = vmul.f32 %v2591_v46, %v3238_v57  ;;  %v2593_v62 = vpop.eup %2592 }
 0xc2c   :  { %1985 = vperm.xlu0 %2506, %v1953_v61   ;;  %v1955_v11 = vmul.f32 %v2593_v62, %v3243_v15  ;;  %v2595_v10 = vpop.eup %2594 }
 0xc2d   :  { %1982 = vperm.xlu1 %2507, %v1951_v1   ;;  %v1957_v4 = vmul.f32 %v2595_v10, %v3246_v24  ;;  %v2597_v6 = vpop.eup %2596 }
 0xc2e   :  { %v1959_v14 = vmul.f32 %v2597_v6, %v3249_v34  ;;  %v2599_v57 = vpop.eup %2598 }
 0xc2f   :  { %v1961_v63 = vmul.f32 %v2599_v57, %v3252_v40  ;;  %v2601_v25 = vpop.eup %2600 }
 0xc30   :  { %v1963_v22 = vmul.f32 %v2601_v25, %v3255_v3  ;;  %v2603_v47 = vpop.eup %2602 }
 0xc31   :  { %1988 = vperm.xlu1 %2507, %v1955_v11   ;;  %v1965_v8 = vmul.f32 %v2603_v47, %v3258_v44 }
 0xc35   :  { %1991 = vperm.xlu1 %2507, %v1957_v4  }
 0xc39   :  { %1994 = vperm.xlu1 %2507, %v1959_v14  }
 0xc3d   :  { %1997 = vperm.xlu1 %2507, %v1961_v63  }
 0xc41   :  { %2000 = vperm.xlu1 %2507, %v1963_v22  }
 0xc45   :  { %2003 = vperm.xlu1 %2507, %v1965_v8  }
 0xcab   :  { %v1986_v15 = vpop.permute.xlu0 %1985 }
 0xcac   :  { %v1983_v21 = vpop.permute.xlu1 %1982  ;;  %v2012_v36 = vrot.slane %v1986_v15, %v2904_v12 }
 0xcad   :  { %v2008_v24 = vrot.slane %v1983_v21, %v2904_v12 }
 0xcaf   :  { %v2037_v44 = vsel %vm548_vm12, %v2012_v36, %v2008_v24 }
 0xcb0   :  { %v1989_v51 = vpop.permute.xlu1 %1988 }
 0xcb1   :  { %v2016_v13 = vrot.slane %v1989_v51, %v2904_v12 }
 0xcb3   :  { %v2038_v54 = vsel %vm550_vm13, %v2016_v13, %v2037_v44 }
 0xcb4   :  { %v1992_v19 = vpop.permute.xlu1 %1991 }
 0xcb5   :  { %v2020_v34 = vrot.slane %v1992_v19, %v2904_v12 }
 0xcb7   :  { %v2039_v17 = vsel %vm552_vm14, %v2020_v34, %v2038_v54 }
 0xcb8   :  { %v1995_v23 = vpop.permute.xlu1 %1994 }
 0xcb9   :  { %v2024_v40 = vrot.slane %v1995_v23, %v2904_v12 }
 0xcbb   :  { %v2040_v30 = vsel %vm554_vm15, %v2024_v40, %v2039_v17 }
 0xcbc   :  { %v1998_v5 = vpop.permute.xlu1 %1997 }
 0xcbd   :  { %v2028_v48 = vrot.slane %v1998_v5, %v2904_v12 }
 0xcbf   :  { %v2041_v58 = vsel %vm556_vm2, %v2028_v48, %v2040_v30 }
 0xcc0   :  { %v2001_v3 = vpop.permute.xlu1 %2000 }
 0xcc1   :  { %v2032_v18 = vrot.slane %v2001_v3, %v2904_v12 }
 0xcc3   :  { %v2042_v56 = vsel %vm558_vm3, %v2032_v18, %v2041_v58 }
 0xcc4   :  { %v2004_v52 = vpop.permute.xlu1 %2003 }
 0xcc5   :  { %v2036_v53 = vrot.slane %v2004_v52, %v2904_v12 }
 0xcc7   :  { %v2043_v55 = vsel %vm560_vm4, %v2036_v53, %v2042_v56 }
 0xcc8   :  { %2443 = vmatmul.mubr.msk.f32.vlgmr.msra.gmra.mrb[8].mxu1 %vm60_vm0, %v2043_v55 }
 0xcc9   :  { %2447 = vmatprep.mubr.msk.f32.mxu1 %vm2637_vm1, %v2636_v2  ;;  %2446 = vmatpush3.msra.mxu1 %v2128_v37 }
 0xcca   :  { %2450 = vmatprep.subr.mxu1 %v2636_v2 }
 0xd9b   :  { %v2112_v32 = vpop.f32.mrb[8].mxu1 }
 0xd9c   :  { %v2113_v20 = vadd.f32 %v2336_v43, %v2112_v32  ;;  %v2444_v33 = vpop.f32.mrb[9].mxu1 }
 0xd9e   :  { %v2116_v27 = vsel %vm60_vm0, %v2113_v20, -inf }
 0xd9f   :  { %2117 = vmax.xlane.f32.xlu0 %v2116_v27 }
 0xe2c   :  { %v2118_v12 = vpop.xlane.xlu0 %2117 }
 0xe2d   :  { %v2119_v0 = vsub.f32 %v2113_v20, %v2118_v12 }
 0xe2f   :  { %v2120_v28 = vmul.f32 1.442695, %v2119_v0 }
 0xe31   :  { %2604 = vpow2.f32 %v2120_v28 }
 0xe3b   :  { %v2605_v7 = vpop.eup %2604 }
 0xe3c   :  { %v2122_v35 = vsel %vm60_vm0, %v2605_v7, 0.0 }
 0xe3d   :  { %2123 = vadd.xlane.f32.xlu1 %v2122_v35 }
 0xeca   :  { %v2124_v39 = vpop.xlane.xlu1 %2123 }
 0xecb   :  { %2606 = vlog2.f32 %v2124_v39 }
 0xed5   :  { %v2607_v9 = vpop.eup %2606 }
 0xed6   :  { %v2126_v41 = vmul.f32 0.6931472, %v2607_v9 }
 0xed8   :  { %v2127_v42 = vsub.f32 %v2119_v0, %v2126_v41 }
 0xeda   :  { %2448 = vmatmul.mubr.msk.f32.vlgmr.msra.gmra.mrb[10].mxu1 %vm60_vm0, %v2127_v42 }
 0xedb   :  { %2452 = vmatprep.mubr.msk.f32.mxu1 %vm2637_vm1, %v2636_v2  ;;  %2451 = vmatpush3.msra.mxu1 %v2210_v59 }
 0xfad   :  { %v2205_v49 = vpop.f32.mrb[10].mxu1 }
 0xfae   :  { %v2206_v29 = vadd.f32 %v2338_v45, %v2205_v49  ;;  %v2449_v50 = vpop.f32.mrb[11].mxu1 }
 0xfb0   :  { %v2209_v60 = vmax.f32 %v2206_v29, 0.0 }
 0xfb2   :  { %2453 = vmatmul.mubr.msk.f32.vlgmr.msra.gmra.mrb[12].mxu1 %vm60_vm0, %v2209_v60 }
0x1085   :  { %v2287_v2 = vpop.f32.mrb[12].mxu1 }
0x1086   :  { %v2288_v46 = vadd.f32 %v2340_v31, %v2287_v2  ;;  %v2454_v61 = vpop.f32.mrb[13].mxu1 }
0x1088   :  { %v2291_v38 = vsub.f32 0.0, %v2288_v46 }
0x108a   :  { %v2292_v1 = vmul.f32 1.442695, %v2291_v38 }
0x108c   :  { %2608 = vpow2.f32 %v2292_v1 }
0x1096   :  { %v2609_v62 = vpop.eup %2608 }
0x1097   :  { %v2294_v26 = vadd.f32 1.0, %v2609_v62 }
0x1099   :  { %2610 = vrcp.f32 %v2294_v26 }
0x10a3   :  { %v2611_v11 = vpop.eup %2610 }
0x10a4   :  { %v2297_v10 = vadd.f32 %v2611_v11, %v2127_v42 }
0x10a6   :  { %2298 = vst.msk [vmem:[#allocation2] sm:$0xff] %vm60_vm0, %v2297_v10 }
0x10a7   :  { %2623 = shalt.err (!%p2620_p4)
}
0x10a8   :  { %s2624_s29 = scalar_lea.hbm %s3359_s14, 128 }
0x10a9   :  { %p2625_p5 = scmp.ne.s32.totalorder %s3359_s14, %s2624_s29  ;;  %p2628_p6 = scmp.lt.u32.totalorder %s2624_s29, %s3359_s14 }
0x10ab   :  { %p2630_p7 = pnand %p2628_p6, %p2625_p5 }
0x10ad   :  { %2633 = shalt.err (!%p2630_p7)
}
0x10ae   :  { %2308 = dma.vmem_to_hbm [thread:$0]  %s2306_s12, 128, %s3359_s14, [#allocation3]  }
0x10af   :  { %2634 = dma.done.wait [#allocation3], 128  }
0x10b0   :  { %2635 = vsyncadd [#allocation3], 4294967168 }
0x10b1   :  { %2312 = vsyncpa [#allocation3], 1 }

</bundles_post_ra>
